<compile_context>
chip_gen: v6e
topology: v6e:2x2x1
jax: 0.10.0
libtpu: 0.0.40
codegen_flags: <defaults>
</compile_context>

<pallas_src>
import functools

import jax
import jax.numpy as jnp
from jax.experimental import pallas as pl
from jax.experimental.pallas import tpu as pltpu

NUM_LAYERS = 5


def emergence_kernel(x_ref, w_ref, b_ref, p_ref, o_ref, *, act_dtype):
    # x_ref:  (TB, D)              activations tile (bf16 preferred at the boundary)
    # w_ref:  (5, D, D)  bf16      fused weights: w[0] = W0.T, w[l>=1] = P @ Wl.T
    # b_ref:  (5, 1, D)  f32       per-layer Linear biases
    # p_ref:  (D, D)     bf16      pattern_recognition (applied once, at the end)
    # o_ref:  (TB, D)              output tile
    h = x_ref[...].astype(act_dtype)          # no-op when x is already act_dtype
    for l in range(NUM_LAYERS):               # static unroll -- 5 MXU matmuls
        z = jnp.dot(h, w_ref[l], preferred_element_type=jnp.float32)
        # bias + ReLU in f32 on the VPU (safe on v5e: no bf16 VALU there), then
        # narrow the live activation back to act_dtype for the next MXU push.
        h = jnp.maximum(z + b_ref[l], 0.0).astype(act_dtype)
    out = jnp.dot(h, p_ref[...], preferred_element_type=jnp.float32)  # 6th matmul
    o_ref[...] = out.astype(o_ref.dtype)


def prepare_params(weights, biases, pattern_recognition):
    """One-time parameter prep (call at init, NOT per forward).

    weights: (5, D, D) in torch nn.Linear (out, in) layout
    biases:  (5, D)
    pattern_recognition: (D, D)
    Returns (fused_w_bf16 (5,D,D), biases_f32 (5,1,D), p_bf16 (D,D)).
    """
    num_layers, d_out, d_in = weights.shape
    assert num_layers == NUM_LAYERS and d_out == d_in
    d = d_in
    fused = [jnp.swapaxes(weights[0], 0, 1)]  # W0.T -> (in, out); one-time cost
    for l in range(1, NUM_LAYERS):
        # P @ W_l.T without an explicit transpose op.
        fused.append(jnp.einsum("ik,ok->io", pattern_recognition, weights[l]))
    fused_w = jnp.stack(fused).astype(jnp.bfloat16)              # (5, D, D)
    b = biases.astype(jnp.float32).reshape(NUM_LAYERS, 1, d)     # (5, 1, D)
    p = pattern_recognition.astype(jnp.bfloat16)                 # (D, D)
    return fused_w, b, p


def _pick_batch_tile(B, max_tile=1024):
    """Largest batch tile that divides B; prefer an EVEN grid >= 2 (v7x: 2 TCs)."""
    candidates = [t for t in (1024, 512, 256, 128, 64, 32, 16, 8) if t <= max_tile]
    for t in candidates:                      # biggest tile with even grid >= 2
        if t < B and B % t == 0 and (B // t) % 2 == 0:
            return t
    for t in candidates:                      # fall back: biggest dividing tile
        if t <= B and B % t == 0:
            return t
    return B


def _vmem_limit_bytes(tb, D, x_bytes, out_bytes):
    """Budget: resident params + double-buffered x/out tiles, with margin."""
    resident = (NUM_LAYERS + 1) * D * D * 2                 # fused W + P, bf16
    resident += NUM_LAYERS * 8 * max(D, 128) * 4            # biases, (8,128)-padded f32
    streamed = 2 * tb * D * (x_bytes + out_bytes)           # double-buffered x/out tiles
    budget = 2 * (resident + streamed) + (8 << 20)          # 2x margin + compiler scratch
    return int(min(max(budget, 16 << 20), 100 << 20))


def emergence_patterns(x, fused_w, b, p, *, tb=None, out_dtype=None,
                       act_dtype=jnp.bfloat16):
    """x: (B, D); fused_w/b/p from prepare_params(). bf16 x/out recommended."""
    B, D = x.shape
    if tb is None:
        tb = _pick_batch_tile(B)
    assert B % tb == 0, "batch must be a multiple of the batch tile"
    if out_dtype is None:
        out_dtype = x.dtype
    grid = (B // tb,)

    kernel = functools.partial(emergence_kernel, act_dtype=act_dtype)
    vmem_limit = _vmem_limit_bytes(
        tb, D, jnp.dtype(x.dtype).itemsize, jnp.dtype(out_dtype).itemsize)

    return pl.pallas_call(
        kernel,
        out_shape=jax.ShapeDtypeStruct((B, D), out_dtype),
        grid_spec=pl.GridSpec(
            grid=grid,
            in_specs=[
                pl.BlockSpec((tb, D), lambda i: (i, 0)),                  # x tile (streamed)
                pl.BlockSpec((NUM_LAYERS, D, D), lambda i: (0, 0, 0)),    # weights (resident)
                pl.BlockSpec((NUM_LAYERS, 1, D), lambda i: (0, 0, 0)),    # biases  (resident)
                pl.BlockSpec((D, D), lambda i: (0, 0)),                   # P       (resident)
            ],
            out_specs=pl.BlockSpec((tb, D), lambda i: (i, 0)),
        ),
        compiler_params=pltpu.CompilerParams(
            dimension_semantics=("parallel",),   # shard batch tiles across v7x's 2 TCs
            vmem_limit_bytes=vmem_limit,
        ),
    )(x, fused_w, b, p)


def reference_forward(x, weights, biases, pattern_recognition):
    """Pure-JAX f32 reference with the ORIGINAL (unfused) op order."""
    h = x.astype(jnp.float32)
    pr = pattern_recognition.astype(jnp.float32)
    for l in range(NUM_LAYERS):
        h = jnp.maximum(h @ weights[l].T + biases[l], 0.0)
        h = h @ pr
    return h


def matched_reference(x, fused_w, b, p):
    """Pure-JAX reference mirroring the kernel math exactly (bf16 I/O + weights)."""
    h = x.astype(jnp.bfloat16)
    for l in range(NUM_LAYERS):
        z = jnp.dot(h, fused_w[l], preferred_element_type=jnp.float32)
        h = jnp.maximum(z + b[l], 0.0).astype(jnp.bfloat16)
    out = jnp.dot(h, p, preferred_element_type=jnp.float32)
    return out.astype(jnp.bfloat16)


if __name__ == "__main__":
    B, D = 1024, 128     # tile picker -> TB=512, grid=(2,): even grid, both v7x TCs busy

    key = jax.random.PRNGKey(0)
    kx, kw, kb, kp = jax.random.split(key, 4)

    x_f32 = jax.random.normal(kx, (B, D), dtype=jnp.float32)
    # Synthetic params matching nn.Linear(dim, dim) x5 + (dim, dim) pattern_recognition,
    # scaled to keep activations O(1).
    weights = jax.random.normal(kw, (NUM_LAYERS, D, D), dtype=jnp.float32) / jnp.sqrt(D)
    biases = jax.random.normal(kb, (NUM_LAYERS, D), dtype=jnp.float32) * 0.01
    pattern_recognition = jax.random.normal(kp, (D, D), dtype=jnp.float32) / jnp.sqrt(D)

    # One-time param prep (fusion + transpose + bf16 cast).
    fused_w, b, p = prepare_params(weights, biases, pattern_recognition)

    # bf16 activation I/O at the kernel boundary (halves recurring HBM traffic).
    x = x_f32.astype(jnp.bfloat16)
    out = emergence_patterns(x, fused_w, b, p, out_dtype=jnp.bfloat16)
    out = jax.block_until_ready(out)
    assert out.shape == (B, D) and out.dtype == jnp.bfloat16
    out_f32 = out.astype(jnp.float32)

    # 1) Exact-math check vs a reference that mirrors the kernel (fused, bf16 I/O).
    matched = matched_reference(x, fused_w, b, p).astype(jnp.float32)
    assert jnp.allclose(out_f32, matched, rtol=2e-2, atol=2e-2), \
        "mismatch vs matched (fused bf16) reference"

    # 2) Semantics check vs the original-order f32 reference; bf16 weights/activations
    #    + associativity reordering shift results slightly -> relative L2 criterion.
    ref = reference_forward(x_f32, weights, biases, pattern_recognition)
    rel_err = jnp.linalg.norm(out_f32 - ref) / jnp.linalg.norm(ref)
    assert rel_err < 5e-2, f"relative L2 error vs f32 reference too large: {rel_err}"

    print("KERNEL_OK")
</pallas_src>

<mosaic_0001>
module attributes {stable_mosaic.version = 11 : i64} {
  func.func @emergence_kernel(%arg0: i32, %arg1: memref<512x128xbf16, #tpu.memory_space<vmem>>, %arg2: memref<5x128x128xbf16, #tpu.memory_space<vmem>>, %arg3: memref<5x1x128xf32, #tpu.memory_space<vmem>>, %arg4: memref<128x128xbf16, #tpu.memory_space<vmem>>, %arg5: memref<512x128xbf16, #tpu.memory_space<vmem>>) attributes {dimension_semantics = [#tpu.dimension_semantics<parallel>], iteration_bounds = array<i64: 2>, scalar_prefetch = 0 : i64, scratch_operands = 0 : i64, tpu.core_type = #tpu.core_type<tc>, window_params = [{transform_indices = @transform_0, window_bounds = array<i64: 512, 128>}, {pipeline_mode = #tpu.pipeline_mode<synchronous>, transform_indices = @transform_1, window_bounds = array<i64: 5, 128, 128>}, {pipeline_mode = #tpu.pipeline_mode<synchronous>, transform_indices = @transform_2, window_bounds = array<i64: 5, 1, 128>}, {pipeline_mode = #tpu.pipeline_mode<synchronous>, transform_indices = @transform_3, window_bounds = array<i64: 128, 128>}, {transform_indices = @transform_4, window_bounds = array<i64: 512, 128>}]} {
    %c0 = arith.constant 0 : index
    %c0_0 = arith.constant 0 : index
    %0 = vector.load %arg1[%c0, %c0_0] : memref<512x128xbf16, #tpu.memory_space<vmem>>, vector<512x128xbf16>
    %c0_1 = arith.constant 0 : index
    %c0_2 = arith.constant 0 : index
    %c0_3 = arith.constant 0 : index
    %1 = vector.load %arg2[%c0_1, %c0_2, %c0_3] : memref<5x128x128xbf16, #tpu.memory_space<vmem>>, vector<1x128x128xbf16>
    %2 = vector.shape_cast %1 : vector<1x128x128xbf16> to vector<128x128xbf16>
    %cst = arith.constant dense<0.000000e+00> : vector<512x128xf32>
    %3 = tpu.matmul %0, %2, %cst {dimension_numbers = #tpu.dot_dimension_numbers<[1], [0], [0], [1], [0, 0, 1, 1], [], []>} : vector<512x128xbf16>, vector<128x128xbf16>, vector<512x128xf32> -> vector<512x128xf32>
    %c0_4 = arith.constant 0 : index
    %c0_5 = arith.constant 0 : index
    %c0_6 = arith.constant 0 : index
    %4 = vector.load %arg3[%c0_4, %c0_5, %c0_6] : memref<5x1x128xf32, #tpu.memory_space<vmem>>, vector<1x1x128xf32>
    %5 = vector.shape_cast %4 : vector<1x1x128xf32> to vector<1x128xf32>
    %6 = vector.broadcast %5 : vector<1x128xf32> to vector<512x128xf32>
    %7 = arith.addf %3, %6 : vector<512x128xf32>
    %cst_7 = arith.constant 0.000000e+00 : f32
    %8 = vector.broadcast %cst_7 : f32 to vector<512x128xf32>
    %9 = arith.maximumf %7, %8 : vector<512x128xf32>
    %10 = arith.truncf %9 : vector<512x128xf32> to vector<512x128xbf16>
    %c1 = arith.constant 1 : index
    %c0_8 = arith.constant 0 : index
    %c0_9 = arith.constant 0 : index
    %11 = vector.load %arg2[%c1, %c0_8, %c0_9] : memref<5x128x128xbf16, #tpu.memory_space<vmem>>, vector<1x128x128xbf16>
    %12 = vector.shape_cast %11 : vector<1x128x128xbf16> to vector<128x128xbf16>
    %cst_10 = arith.constant dense<0.000000e+00> : vector<512x128xf32>
    %13 = tpu.matmul %10, %12, %cst_10 {dimension_numbers = #tpu.dot_dimension_numbers<[1], [0], [0], [1], [0, 0, 1, 1], [], []>} : vector<512x128xbf16>, vector<128x128xbf16>, vector<512x128xf32> -> vector<512x128xf32>
    %c1_11 = arith.constant 1 : index
    %c0_12 = arith.constant 0 : index
    %c0_13 = arith.constant 0 : index
    %14 = vector.load %arg3[%c1_11, %c0_12, %c0_13] : memref<5x1x128xf32, #tpu.memory_space<vmem>>, vector<1x1x128xf32>
    %15 = vector.shape_cast %14 : vector<1x1x128xf32> to vector<1x128xf32>
    %16 = vector.broadcast %15 : vector<1x128xf32> to vector<512x128xf32>
    %17 = arith.addf %13, %16 : vector<512x128xf32>
    %cst_14 = arith.constant 0.000000e+00 : f32
    %18 = vector.broadcast %cst_14 : f32 to vector<512x128xf32>
    %19 = arith.maximumf %17, %18 : vector<512x128xf32>
    %20 = arith.truncf %19 : vector<512x128xf32> to vector<512x128xbf16>
    %c2 = arith.constant 2 : index
    %c0_15 = arith.constant 0 : index
    %c0_16 = arith.constant 0 : index
    %21 = vector.load %arg2[%c2, %c0_15, %c0_16] : memref<5x128x128xbf16, #tpu.memory_space<vmem>>, vector<1x128x128xbf16>
    %22 = vector.shape_cast %21 : vector<1x128x128xbf16> to vector<128x128xbf16>
    %cst_17 = arith.constant dense<0.000000e+00> : vector<512x128xf32>
    %23 = tpu.matmul %20, %22, %cst_17 {dimension_numbers = #tpu.dot_dimension_numbers<[1], [0], [0], [1], [0, 0, 1, 1], [], []>} : vector<512x128xbf16>, vector<128x128xbf16>, vector<512x128xf32> -> vector<512x128xf32>
    %c2_18 = arith.constant 2 : index
    %c0_19 = arith.constant 0 : index
    %c0_20 = arith.constant 0 : index
    %24 = vector.load %arg3[%c2_18, %c0_19, %c0_20] : memref<5x1x128xf32, #tpu.memory_space<vmem>>, vector<1x1x128xf32>
    %25 = vector.shape_cast %24 : vector<1x1x128xf32> to vector<1x128xf32>
    %26 = vector.broadcast %25 : vector<1x128xf32> to vector<512x128xf32>
    %27 = arith.addf %23, %26 : vector<512x128xf32>
    %cst_21 = arith.constant 0.000000e+00 : f32
    %28 = vector.broadcast %cst_21 : f32 to vector<512x128xf32>
    %29 = arith.maximumf %27, %28 : vector<512x128xf32>
    %30 = arith.truncf %29 : vector<512x128xf32> to vector<512x128xbf16>
    %c3 = arith.constant 3 : index
    %c0_22 = arith.constant 0 : index
    %c0_23 = arith.constant 0 : index
    %31 = vector.load %arg2[%c3, %c0_22, %c0_23] : memref<5x128x128xbf16, #tpu.memory_space<vmem>>, vector<1x128x128xbf16>
    %32 = vector.shape_cast %31 : vector<1x128x128xbf16> to vector<128x128xbf16>
    %cst_24 = arith.constant dense<0.000000e+00> : vector<512x128xf32>
    %33 = tpu.matmul %30, %32, %cst_24 {dimension_numbers = #tpu.dot_dimension_numbers<[1], [0], [0], [1], [0, 0, 1, 1], [], []>} : vector<512x128xbf16>, vector<128x128xbf16>, vector<512x128xf32> -> vector<512x128xf32>
    %c3_25 = arith.constant 3 : index
    %c0_26 = arith.constant 0 : index
    %c0_27 = arith.constant 0 : index
    %34 = vector.load %arg3[%c3_25, %c0_26, %c0_27] : memref<5x1x128xf32, #tpu.memory_space<vmem>>, vector<1x1x128xf32>
    %35 = vector.shape_cast %34 : vector<1x1x128xf32> to vector<1x128xf32>
    %36 = vector.broadcast %35 : vector<1x128xf32> to vector<512x128xf32>
    %37 = arith.addf %33, %36 : vector<512x128xf32>
    %cst_28 = arith.constant 0.000000e+00 : f32
    %38 = vector.broadcast %cst_28 : f32 to vector<512x128xf32>
    %39 = arith.maximumf %37, %38 : vector<512x128xf32>
    %40 = arith.truncf %39 : vector<512x128xf32> to vector<512x128xbf16>
    %c4 = arith.constant 4 : index
    %c0_29 = arith.constant 0 : index
    %c0_30 = arith.constant 0 : index
    %41 = vector.load %arg2[%c4, %c0_29, %c0_30] : memref<5x128x128xbf16, #tpu.memory_space<vmem>>, vector<1x128x128xbf16>
    %42 = vector.shape_cast %41 : vector<1x128x128xbf16> to vector<128x128xbf16>
    %cst_31 = arith.constant dense<0.000000e+00> : vector<512x128xf32>
    %43 = tpu.matmul %40, %42, %cst_31 {dimension_numbers = #tpu.dot_dimension_numbers<[1], [0], [0], [1], [0, 0, 1, 1], [], []>} : vector<512x128xbf16>, vector<128x128xbf16>, vector<512x128xf32> -> vector<512x128xf32>
    %c4_32 = arith.constant 4 : index
    %c0_33 = arith.constant 0 : index
    %c0_34 = arith.constant 0 : index
    %44 = vector.load %arg3[%c4_32, %c0_33, %c0_34] : memref<5x1x128xf32, #tpu.memory_space<vmem>>, vector<1x1x128xf32>
    %45 = vector.shape_cast %44 : vector<1x1x128xf32> to vector<1x128xf32>
    %46 = vector.broadcast %45 : vector<1x128xf32> to vector<512x128xf32>
    %47 = arith.addf %43, %46 : vector<512x128xf32>
    %cst_35 = arith.constant 0.000000e+00 : f32
    %48 = vector.broadcast %cst_35 : f32 to vector<512x128xf32>
    %49 = arith.maximumf %47, %48 : vector<512x128xf32>
    %50 = arith.truncf %49 : vector<512x128xf32> to vector<512x128xbf16>
    %c0_36 = arith.constant 0 : index
    %c0_37 = arith.constant 0 : index
    %51 = vector.load %arg4[%c0_36, %c0_37] : memref<128x128xbf16, #tpu.memory_space<vmem>>, vector<128x128xbf16>
    %cst_38 = arith.constant dense<0.000000e+00> : vector<512x128xf32>
    %52 = tpu.matmul %50, %51, %cst_38 {dimension_numbers = #tpu.dot_dimension_numbers<[1], [0], [0], [1], [0, 0, 1, 1], [], []>} : vector<512x128xbf16>, vector<128x128xbf16>, vector<512x128xf32> -> vector<512x128xf32>
    %53 = arith.truncf %52 : vector<512x128xf32> to vector<512x128xbf16>
    %c0_39 = arith.constant 0 : index
    %c0_40 = arith.constant 0 : index
    %54 = vector.load %arg5[%c0_39, %c0_40] : memref<512x128xbf16, #tpu.memory_space<vmem>>, vector<512x128xbf16>
    tpu.vector_store %arg5[%c0_39, %c0_40], %53 {strides = array<i32>} : memref<512x128xbf16, #tpu.memory_space<vmem>>, vector<512x128xbf16>,
    return
  }
  func.func @transform_0(%arg0: i32) -> (i32, i32) {
    %c0_i32 = arith.constant 0 : i32
    %c0_i32_0 = arith.constant 0 : i32
    return %arg0, %c0_i32 : i32, i32
  }
  func.func @transform_1(%arg0: i32) -> (i32, i32, i32) {
    %c0_i32 = arith.constant 0 : i32
    %c0_i32_0 = arith.constant 0 : i32
    %c0_i32_1 = arith.constant 0 : i32
    %c0_i32_2 = arith.constant 0 : i32
    return %c0_i32, %c0_i32_0, %c0_i32_1 : i32, i32, i32
  }
  func.func @transform_2(%arg0: i32) -> (i32, i32, i32) {
    %c0_i32 = arith.constant 0 : i32
    %c0_i32_0 = arith.constant 0 : i32
    %c0_i32_1 = arith.constant 0 : i32
    %c0_i32_2 = arith.constant 0 : i32
    return %c0_i32, %c0_i32_0, %c0_i32_1 : i32, i32, i32
  }
  func.func @transform_3(%arg0: i32) -> (i32, i32) {
    %c0_i32 = arith.constant 0 : i32
    %c0_i32_0 = arith.constant 0 : i32
    %c0_i32_1 = arith.constant 0 : i32
    return %c0_i32, %c0_i32_0 : i32, i32
  }
  func.func @transform_4(%arg0: i32) -> (i32, i32) {
    %c0_i32 = arith.constant 0 : i32
    %c0_i32_0 = arith.constant 0 : i32
    return %arg0, %c0_i32 : i32, i32
  }
}

</mosaic_0001>

<bundles_post_ra>
// kernel: tpu_custom_call.1
= control target key start
LH: loop header
LB: loop body
LE: loop exit
PB: predicated region body
PF: predicated region fallthrough
CT: control target
= control target key end

     0   :  { %9 = vsyncpa [#allocation3], 0  ;;  %s5741_s0 = inlined_call_operand.hbm [shape: bf16[1024,128], index: 0, kind: input, shape index: {}]   ;;  %s5742_s1 = inlined_call_operand.hbm [shape: bf16[5,128,128], index: 1, kind: input, shape index: {}]   ;;  %s5743_s2 = inlined_call_operand.hbm [shape: f32[5,1,128], index: 2, kind: input, shape index: {}]   ;;  %s5744_s3 = inlined_call_operand.hbm [shape: bf16[128,128], index: 3, kind: input, shape index: {}]   ;;  %s5745_s4 = inlined_call_operand.hbm [shape: bf16[1024,128], index: 4, kind: output, shape index: {}]  }
   0x1   :  { %11 = vsyncpa [#allocation3 + $0x1], 0 }
   0x2   :  { %12 = vsyncpa [#allocation6], 0 }
   0x3   :  { %13 = vsyncpa [#allocation9], 0 }
   0x4   :  { %14 = vsyncpa [#allocation4], 0 }
   0x5   :  { %16 = vsyncpa [#allocation4 + $0x1], 0  ;;  %s5121_s15 = smov 0   ;;  %s5123_s16 = smov 0  }
   0x6   :  { %s5125_s17 = smov 0   ;;  %s5127_s18 = smov 0  }
   0x7 LB: > { %s5142_s19 = sadd.s32 4294967295, %s5083_s18   ;;  %s3596_s20 = sadd.s32 4294967294, %s5083_s18   ;;  %s5083_s18 = sphi %s5127_s18, %s5768_s18   ;;  %s5079_s17 = sphi %s5125_s17, %s5767_s17   ;;  %s5075_s16 = sphi %s5123_s16, %s5766_s16   ;;  %s5071_s15 = sphi %s5121_s15, %s5765_s15  }
   0x8   : > { %p42_p0 = scmp.ne.s32.totalorder %s5075_s16, %s5071_s15  ;;  %p5746_p1 = scmp.eq.s32.totalorder %s5142_s19, 0 }
   0x9   : > { %p129_p2 = scmp.eq.s32.totalorder %s5142_s19, 1  ;;  %p135_p3 = scmp.eq.s32.totalorder %s3596_s20, 1 }
   0xa   : > { %p5151_p4 = por %p5746_p1, %p42_p0  ;;  %p3597_p5 = scmp.ge.s32.totalorder %s5083_s18, 1 }
   0xb   : > { %p5156_p6 = por %p135_p3, %p42_p0  ;;  %p142_p7 = scmp.lt.s32.totalorder %s5083_s18, 3 }
   0xc   : > { %s5750_s21 = scalar_select %p5151_p4, 1, 0 }
   0xd   : > { %s5751_s22 = scalar_select %p5156_p6, 1, 0 }
   0xe   : > { %p5161_p8 = pnand %p3597_p5, %p142_p7  ;;  %s5085_s24 = smov [#allocation5]  }
   0xf   : > { %s154_s25 = sshll.u32 %s5085_s24, 4  ;;  %s5086_s27 = smov [#allocation7]   ;;  %s155_s25 = int_to_ptr.vmem [resolvable:$true] %s154_s25 }
  0x10   : > { %s5752_s23 = scalar_select %p5161_p8, 1, 0 }
  0x11   : > { %p4758_p9 = pneg %p5161_p8  ;;  %s167_s28 = sshll.u32 %s5086_s27, 4  ;;  %s5174_s28 = int_to_ptr.vmem [resolvable:$true] %s167_s28 }
  0x12   : > { %s4916_s29 = scalar_lea.vmem %s155_s25, 5120  ;;  %p4924_p5 = scmp.lt.s32.totalorder %s155_s25, %s155_s25 }
  0x13   : > { %p5170_p11 = pnand %p4758_p9, %p5746_p1  ;;  %p4917_p13 = scmp.ne.s32.totalorder %s155_s25, %s4916_s29 }
  0x14   : > { %p4925_p7 = scmp.lt.s32.totalorder %s4916_s29, %s4916_s29 }
  0x15   : > { %p4907_p12 = pneg %p5170_p11 }
  0x16   : > { %p4926_p9 = por %p4925_p7, %p4924_p5 }
  0x17   : > { %p4919_p0 = pnand %p4917_p13, %p4907_p12 }
  0x19   : > { %p4920_p3 = pneg %p4919_p0 }
  0x1b   : > { %p4927_p10 = pnand %p4926_p9, %p4920_p3 }
  0x1d   : > { %4930 = shalt.err (!%p4927_p10)
}
  0x1e   : > { %s5087_s30 = smov 64   ;;  %s5088_s5 = smov 4  }
  0x1f   : > { %4761 = dma.hbm_to_vmem [thread:$0]  (!%p5170_p11), %s5742_s1, 5120, %s155_s25, [#allocation6], %s5087_s30, %s5087_s30, %s5088_s5  }
  0x20   : > { %s4942_s8 = scalar_lea.vmem %s5174_s28, 80  ;;  %s4949_s9 = scalar_lea.vmem %s5174_s28, 96 }
  0x21   : > { %p4943_p13 = scmp.ne.s32.totalorder %s5174_s28, %s4942_s8  ;;  %p4950_p3 = scmp.lt.s32.totalorder %s5174_s28, %s5174_s28 }
  0x22   : > { %p4951_p5 = scmp.lt.s32.totalorder %s4949_s9, %s4942_s8 }
  0x23   : > { %p4945_p10 = pnand %p4943_p13, %p4907_p12 }
  0x24   : > { %p4952_p7 = por %p4951_p5, %p4950_p3 }
  0x25   : > { %p4946_p0 = pneg %p4945_p10 }
  0x27   : > { %p4953_p9 = pnand %p4952_p7, %p4946_p0 }
  0x29   : > { %4956 = shalt.err (!%p4953_p9)
}
  0x2a   : > { %s5089_s10 = smov 16   ;;  %s5090_s11 = smov 1  }
  0x2b   : > { %4764 = dma.hbm_to_vmem [thread:$0]  (!%p5170_p11), %s5743_s2, 80, %s5174_s28, [#allocation6], %s5089_s10, %s5089_s10, %s5090_s11  }
  0x2c   : > { %s5091_s14 = smov [#allocation8]   ;;  %s5204_s24 = sadd.s32 1, %s5083_s18  }
  0x2d   : > { %s180_s20 = sshll.u32 %s5091_s14, 4  ;;  %s181_s20 = int_to_ptr.vmem [resolvable:$true] %s180_s20 }
  0x2e   : > { %s4968_s25 = scalar_lea.vmem %s181_s20, 1024  ;;  %p4976_p3 = scmp.lt.s32.totalorder %s181_s20, %s181_s20 }
  0x2f   : > { %p4969_p13 = scmp.ne.s32.totalorder %s181_s20, %s4968_s25  ;;  %p4977_p5 = scmp.lt.s32.totalorder %s4968_s25, %s4968_s25 }
  0x31   : > { %p4971_p10 = pnand %p4969_p13, %p4907_p12  ;;  %p4978_p7 = por %p4977_p5, %p4976_p3 }
  0x33   : > { %p4972_p0 = pneg %p4971_p10 }
  0x35   : > { %p4979_p9 = pnand %p4978_p7, %p4972_p0 }
  0x37   : > { %4982 = shalt.err (!%p4979_p9)
}
  0x38   : > { %4767 = dma.hbm_to_vmem [thread:$0]  (!%p5170_p11), %s5744_s3, 1024, %s181_s20, [#allocation9], %s5087_s30, %s5087_s30, %s5088_s5  }
  0x39   : > { %s26_s29 = ssub.s32 %s5083_s18, %s5204_s24  ;;  %s29_s26 = sadd.s32 1, %s5079_s17 }
  0x3a   : > { %p27_p12 = scmp.eq.s32.totalorder %s26_s29, 0  ;;  %p36_p13 = scmp.ne.s32.totalorder %s5079_s17, %s5075_s16 }
  0x3b   : > { %p37_p10 = scmp.eq.s32.totalorder %s5083_s18, 0  ;;  %p4779_p0 = scmp.lt.s32.totalorder %s5083_s18, 2 }
  0x3c   : > { %s5225_s6 = scalar_select %p27_p12, %s5079_s17, %s29_s26  }
  0x3d   : > { %p38_p3 = por %p37_p10, %p36_p13  ;;  %p5229_p5 = por %p129_p2, %p36_p13 }
  0x3e   : > { %s194_s8 = sand.u32 1, %s5079_s17   ;;  %s3765_s9 = sshll.u32 %s5083_s18, 12 }
  0x3f   : > { %s5754_s7 = scalar_select %p5229_p5, 1, 0 }
  0x40   : > { %s3602_s10 = sshll.u32 %s194_s8, 8  ;;  %s5238_s13 = scalar_lea.hbm %s5741_s0, %s3765_s9 }
  0x41   : > { %s198_s14 = scalar_lea.vmem [#allocation2], %s3602_s10  ;;  %p5240_p11 = pnand %p4779_p0, %p38_p3 }
  0x42   : > { %s205_s20 = sshll.u32 %s198_s14, 4  ;;  %s5246_s27 = scalar_lea.sflag [#allocation3], %s194_s8  ;;  %s5244_s20 = int_to_ptr.vmem [resolvable:$true] %s205_s20 }
  0x43   : > { %s4983_s28 = scalar_lea.hbm %s5238_s13, 4096  ;;  %p4985_p7 = pneg %p5240_p11 }
  0x44   : > { %p4984_p2 = scmp.ne.s32.totalorder %s5238_s13, %s4983_s28  ;;  %s4988_s9 = scalar_lea.hbm %s5741_s0, 8192 }
  0x45   : > { %p4989_p13 = scmp.lt.s32.totalorder %s5238_s13, %s5741_s0  ;;  %p4990_p10 = scmp.lt.s32.totalorder %s4988_s9, %s4983_s28 }
  0x46   : > { %p4986_p9 = pnand %p4985_p7, %p4984_p2 }
  0x47   : > { %p4991_p0 = por %p4990_p10, %p4989_p13 }
  0x48   : > { %p4987_p12 = pneg %p4986_p9 }
  0x4a   : > { %p4992_p3 = pnand %p4991_p0, %p4987_p12 }
  0x4c   : > { %4995 = shalt.err (!%p4992_p3)
}
  0x4d   : > { %s4996_s8 = scalar_lea.vmem %s5244_s20, 4096  ;;  %s5092_s12 = smov [#allocation2]  }
  0x4e   : > { %p4997_p1 = scmp.ne.s32.totalorder %s5244_s20, %s4996_s8  ;;  %s5001_s14 = sshll.u32 %s5092_s12, 4  ;;  %s5002_s14 = int_to_ptr.vmem [resolvable:$false] %s5001_s14 }
  0x4f   : > { %s5003_s29 = scalar_lea.vmem %s5002_s14, 8192  ;;  %p5004_p9 = scmp.lt.s32.totalorder %s5244_s20, %s5002_s14 }
  0x50   : > { %p4999_p6 = pnand %p4997_p1, %p4985_p7  ;;  %p5005_p5 = scmp.lt.s32.totalorder %s5003_s29, %s4996_s8 }
  0x52   : > { %p5000_p2 = pneg %p4999_p6  ;;  %p5006_p4 = por %p5005_p5, %p5004_p9 }
  0x54   : > { %p5007_p8 = pnand %p5006_p4, %p5000_p2 }
  0x56   : > { %5010 = shalt.err (!%p5007_p8)
}
  0x57   : > { %4771 = dma.hbm_to_vmem [thread:$0]  (!%p5240_p11), %s5238_s13, 4096, %s5244_s20, %s5246_s27, %s5087_s30, %s5087_s30, %s5088_s5  }
  0x58   : > { %p5756_p1 = scmp.ne.s32.totalorder %s5752_s23, 0 }
  0x59   : > { %s5273_s28 = sand.u32 (!%p5756_p1), 1, %s5075_s16   ;;  %p5757_p4 = scmp.ne.s32.totalorder (!%p5756_p1), %s5750_s21, 0 }
  0x5a   : > { %217 = sbr.rel (%p5756_p1) target bundleno = 1500 (0x5dc), region = 36  ;;  %s3606_s26 = sshll.u32 (!%p5756_p1), %s5273_s28, 8 }
  0x5b   : > { %s220_s9 = scalar_lea.sflag (!%p5756_p1), [#allocation3], %s5273_s28  ;;  %s5279_s25 = scalar_lea.vmem (!%p5756_p1), [#allocation2], %s3606_s26 }
  0x5f   : > { %5054 = dma.done.wait (%p5757_p4), %s220_s9, 4096  }
  0x60   : > { %5056 = vsyncadd (%p5757_p4), %s220_s9, 4294963200  ;;  %p5758_p6 = scmp.eq.s32.totalorder %s5142_s19, 0 }
  0x62   : > { %5058 = dma.done.wait (%p5758_p6), [#allocation6], 5200   ;;  %p5759_p8 = pmov %p5758_p6 }
  0x63   : > { %p5760_p5 = pmov %p5758_p6 }
  0x64   : > { %5060 = vsyncadd (%p5759_p8), [#allocation6], 4294962096 }
  0x65   : > { %5062 = dma.done.wait (%p5760_p5), [#allocation9], 1024   ;;  %p5761_p11 = pmov %p5760_p5 }
  0x66   : > { %v4825_v0 = vld [vmem:[#allocation5 + $0x38] sm:$0xff]   ;;  %v4826_v1 = vld [vmem:[#allocation5 + $0x30] sm:$0xff]   ;;  %v4827_v2 = vld [vmem:[#allocation5 + $0x28] sm:$0xff]   ;;  %s5657_s21 = scalar_lea.vmem [#allocation10], %s3606_s26  ;;  %s3830_s23 = sshll.u32 %s5142_s19, 12 }
  0x67   : > { %5064 = vsyncadd (%p5761_p11), [#allocation9], 4294966272  ;;  %4262 = vmatprep.subr.bf16.mxu0 %v4825_v0  ;;  %v4828_v3 = vld [vmem:[#allocation5 + $0x20] sm:$0xff]   ;;  %v4829_v5 = vld [vmem:[#allocation5 + $0x18] sm:$0xff]   ;;  %s3494_s30 = sshll.u32 %s5657_s21, 4  ;;  %s5694_s20 = scalar_lea.hbm %s5745_s4, %s3830_s23  ;;  %s5696_s30 = int_to_ptr.vmem [resolvable:$true] %s3494_s30 }
  0x68   : > { %4263 = vmatpush3.bf16.msra.mxu0 %v4825_v0  ;;  %v4833_v4 = vld [vmem:[%s5279_s25] sm:$0xff]   ;;  %v4830_v6 = vld [vmem:[#allocation5 + $0x10] sm:$0xff]   ;;  %v4831_v7 = vld [vmem:[#allocation5 + $0x8] sm:$0xff]   ;;  %s3481_s27 = scalar_lea.sflag [#allocation4], %s5273_s28  ;;  %s5011_s10 = scalar_lea.vmem %s5696_s30, 4096 }
  0x69   : > { %4264 = vmatprep.subr.bf16.mxu0 %v4826_v1  ;;  %4278 = vmatprep.mubr.bf16.mxu0 %v4833_v4  ;;  %v4832_v8 = vld [vmem:[#allocation5] sm:$0xff]   ;;  %v4834_v9 = vld [vmem:[%s5279_s25 + $0x8] sm:$0xff]   ;;  %v4835_v10 = vld [vmem:[%s5279_s25 + $0x10] sm:$0xff]   ;;  %p5012_p7 = scmp.ne.s32.totalorder %s5696_s30, %s5011_s10  ;;  %p5762_p12 = scmp.ne.s32.totalorder %s5754_s7, 0 }
  0x6a   : > { %v4836_v11 = vld [vmem:[%s5279_s25 + $0x18] sm:$0xff]   ;;  %v4837_v12 = vld [vmem:[%s5279_s25 + $0x20] sm:$0xff]   ;;  %v4866_v14 = vld [vmem:[#allocation5 + $0x70] sm:$0xff]   ;;  %s5093_s19 = smov [#allocation10]  }
  0x6b   : > { %v4865_v13 = vld [vmem:[#allocation5 + $0x78] sm:$0xff]   ;;  %v4838_v15 = vld [vmem:[%s5279_s25 + $0x28] sm:$0xff]   ;;  %v4839_v17 = vld [vmem:[%s5279_s25 + $0x30] sm:$0xff]   ;;  %p5013_p13 = pnand %p5012_p7, %p5762_p12  ;;  %s5015_s11 = sshll.u32 %s5093_s19, 4  ;;  %s5016_s11 = int_to_ptr.vmem [resolvable:$false] %s5015_s11 }
  0x6c   : > { %4265 = vmatpush3.bf16.msra.mxu0 %v4826_v1  ;;  %4342 = vmatprep.subr.bf16.mxu1 %v4865_v13  ;;  %v4867_v16 = vld [vmem:[#allocation5 + $0x68] sm:$0xff]   ;;  %v4868_v18 = vld [vmem:[#allocation5 + $0x60] sm:$0xff]   ;;  %v4869_v19 = vld [vmem:[#allocation5 + $0x58] sm:$0xff]   ;;  %s5017_s8 = scalar_lea.vmem %s5016_s11, 8192  ;;  %p5018_p0 = scmp.lt.s32.totalorder %s5696_s30, %s5016_s11 }
  0x6d   : > { %4266 = vmatprep.subr.bf16.mxu0 %v4827_v2  ;;  %4343 = vmatpush3.bf16.msra.mxu1 %v4865_v13  ;;  %v4840_v20 = vld [vmem:[%s5279_s25 + $0x38] sm:$0xff]   ;;  %v4841_v21 = vld [vmem:[%s5279_s25 + $0x40] sm:$0xff]   ;;  %v4842_v22 = vld [vmem:[%s5279_s25 + $0x48] sm:$0xff]   ;;  %p5014_p10 = pneg %p5013_p13  ;;  %p5019_p3 = scmp.lt.s32.totalorder %s5017_s8, %s5011_s10 }
  0x6e   : > { %4344 = vmatprep.subr.bf16.mxu1 %v4866_v14  ;;  %v4843_v23 = vld [vmem:[%s5279_s25 + $0x50] sm:$0xff]   ;;  %v4844_v24 = vld [vmem:[%s5279_s25 + $0x58] sm:$0xff]   ;;  %v4845_v25 = vld [vmem:[%s5279_s25 + $0x60] sm:$0xff]  }
  0x6f   : > { %v4846_v26 = vld [vmem:[%s5279_s25 + $0x68] sm:$0xff]   ;;  %v4847_v27 = vld [vmem:[%s5279_s25 + $0x70] sm:$0xff]   ;;  %v4848_v28 = vld [vmem:[%s5279_s25 + $0x78] sm:$0xff]   ;;  %p5020_p2 = por %p5019_p3, %p5018_p0 }
  0x70   : > { %4267 = vmatpush3.bf16.msra.mxu0 %v4827_v2  ;;  %v4849_v29 = vld [vmem:[%s5279_s25 + $0x80] sm:$0xff]   ;;  %v4850_v30 = vld [vmem:[%s5279_s25 + $0x88] sm:$0xff]   ;;  %v4851_v31 = vld [vmem:[%s5279_s25 + $0x90] sm:$0xff]  }
  0x71   : > { %4268 = vmatprep.subr.bf16.mxu0 %v4828_v3  ;;  %4345 = vmatpush3.bf16.msra.mxu1 %v4866_v14  ;;  %v4870_v32 = vld [vmem:[#allocation5 + $0x50] sm:$0xff]   ;;  %v4852_v33 = vld [vmem:[%s5279_s25 + $0x98] sm:$0xff]   ;;  %v4871_v34 = vld [vmem:[#allocation5 + $0x48] sm:$0xff]   ;;  %p5021_p9 = pnand %p5020_p2, %p5014_p10 }
  0x72   : > { %4346 = vmatprep.subr.bf16.mxu1 %v4867_v16  ;;  %v4853_v35 = vld [vmem:[%s5279_s25 + $0xa0] sm:$0xff]   ;;  %v4854_v37 = vld [vmem:[%s5279_s25 + $0xa8] sm:$0xff]   ;;  %v4855_v38 = vld [vmem:[%s5279_s25 + $0xb0] sm:$0xff]  }
  0x73   : > { %v4872_v36 = vld [vmem:[#allocation5 + $0x40] sm:$0xff]   ;;  %v4856_v39 = vld [vmem:[%s5279_s25 + $0xb8] sm:$0xff]   ;;  %v4858_v41 = vld [vmem:[%s5279_s25 + $0xc8] sm:$0xff]  }
  0x74   : > { %4269 = vmatpush3.bf16.msra.mxu0 %v4828_v3  ;;  %v4857_v40 = vld [vmem:[%s5279_s25 + $0xc0] sm:$0xff]   ;;  %v4859_v42 = vld [vmem:[%s5279_s25 + $0xd0] sm:$0xff]   ;;  %v4860_v43 = vld [vmem:[%s5279_s25 + $0xd8] sm:$0xff]  }
  0x75   : > { %4270 = vmatprep.subr.bf16.mxu0 %v4829_v5  ;;  %4347 = vmatpush3.bf16.msra.mxu1 %v4867_v16  ;;  %v4861_v44 = vld [vmem:[%s5279_s25 + $0xe0] sm:$0xff]   ;;  %v4862_v45 = vld [vmem:[%s5279_s25 + $0xe8] sm:$0xff]   ;;  %v4863_v46 = vld [vmem:[%s5279_s25 + $0xf0] sm:$0xff]  }
  0x76   : > { %4348 = vmatprep.subr.bf16.mxu1 %v4868_v18  ;;  %v4864_v47 = vld [vmem:[%s5279_s25 + $0xf8] sm:$0xff]   ;;  %v4874_v49 = vld [vmem:[#allocation5 + $0xb0] sm:$0xff]   ;;  %v4875_v50 = vld [vmem:[#allocation5 + $0xa8] sm:$0xff]  }
  0x77   : > { %v4873_v48 = vld [vmem:[#allocation5 + $0xb8] sm:$0xff]   ;;  %v5325_v53 = vld [vmem:[#allocation7] ss:$0 sm:$0xff]  ;;  %v4878_v4 = vld [vmem:[#allocation5 + $0x90] sm:$0xff]  }
  0x78   : > { %4271 = vmatpush3.bf16.msra.mxu0 %v4829_v5  ;;  %v4876_v59 = vld [vmem:[#allocation5 + $0xa0] sm:$0xff]   ;;  %v4877_v60 = vld [vmem:[#allocation5 + $0x98] sm:$0xff]  }
  0x79   : > { %4272 = vmatprep.subr.bf16.mxu0 %v4830_v6  ;;  %4349 = vmatpush3.bf16.msra.mxu1 %v4868_v18 }
  0x7a   : > { %4350 = vmatprep.subr.bf16.mxu1 %v4869_v19 }
  0x7c   : > { %4273 = vmatpush3.bf16.msra.mxu0 %v4830_v6 }
  0x7d   : > { %4274 = vmatprep.subr.bf16.mxu0 %v4831_v7  ;;  %4351 = vmatpush3.bf16.msra.mxu1 %v4869_v19 }
  0x7e   : > { %4352 = vmatprep.subr.bf16.mxu1 %v4870_v32 }
  0x80   : > { %4275 = vmatpush3.bf16.msra.mxu0 %v4831_v7 }
  0x81   : > { %4276 = vmatprep.subr.bf16.mxu0 %v4832_v8  ;;  %4353 = vmatpush3.bf16.msra.mxu1 %v4870_v32 }
  0x82   : > { %4354 = vmatprep.subr.bf16.mxu1 %v4871_v34 }
  0x84   : > { %4277 = vmatpush3.bf16.msra.mxu0 %v4832_v8 }
  0x85   : > { %4355 = vmatpush3.bf16.msra.mxu1 %v4871_v34  ;;  %4422 = vmatprep.subr.bf16.mxu0 %v4873_v48 }
  0x86   : > { %4356 = vmatprep.subr.bf16.mxu1 %v4872_v36 }
  0x87   : > { %4279 = vmatmul.mubr.bf16.vlgmr.msra.gmra.mxu0 %v4834_v9 }
  0x88   : > { %4282 = vmatprep.mubr.bf16.mxu0 %v4835_v10  ;;  %4423 = vmatpush3.bf16.msra.mxu0 %v4873_v48 }
  0x89   : > { %4357 = vmatpush3.bf16.msra.mxu1 %v4872_v36  ;;  %4424 = vmatprep.subr.bf16.mxu0 %v4874_v49 }
  0x8c   : > { %4425 = vmatpush3.bf16.msra.mxu0 %v4874_v49 }
  0x8d   : > { %4426 = vmatprep.subr.bf16.mxu0 %v4875_v50 }
  0x8f   : > { %4283 = vmatmul.mubr.bf16.gmra.mxu0 %v4836_v11 }
  0x90   : > { %4286 = vmatprep.mubr.bf16.mxu0 %v4837_v12  ;;  %4427 = vmatpush3.bf16.msra.mxu0 %v4875_v50  ;;  %v4879_v12 = vld [vmem:[#allocation5 + $0x88] sm:$0xff]  }
  0x91   : > { %4428 = vmatprep.subr.bf16.mxu0 %v4876_v59 }
  0x94   : > { %4429 = vmatpush3.bf16.msra.mxu0 %v4876_v59 }
  0x95   : > { %4430 = vmatprep.subr.bf16.mxu0 %v4877_v60 }
  0x97   : > { %4287 = vmatmul.mubr.bf16.gmra.mxu0 %v4838_v15 }
  0x98   : > { %4290 = vmatprep.mubr.bf16.mxu0 %v4839_v17  ;;  %4431 = vmatpush3.bf16.msra.mxu0 %v4877_v60 }
  0x99   : > { %4432 = vmatprep.subr.bf16.mxu0 %v4878_v4 }
  0x9c   : > { %4433 = vmatpush3.bf16.msra.mxu0 %v4878_v4 }
  0x9d   : > { %4434 = vmatprep.subr.bf16.mxu0 %v4879_v12 }
  0x9f   : > { %4291 = vmatmul.mubr.bf16.gmra.mxu0 %v4840_v20  ;;  %v4880_v20 = vld [vmem:[#allocation5 + $0x80] sm:$0xff]  }
  0xa0   : > { %4294 = vmatprep.mubr.bf16.mxu0 %v4841_v21  ;;  %4435 = vmatpush3.bf16.msra.mxu0 %v4879_v12 }
  0xa1   : > { %4436 = vmatprep.subr.bf16.mxu0 %v4880_v20 }
  0xa4   : > { %4437 = vmatpush3.bf16.msra.mxu0 %v4880_v20 }
  0xa7   : > { %4295 = vmatmul.mubr.bf16.gmra.mxu0 %v4842_v22 }
  0xa8   : > { %4298 = vmatprep.mubr.bf16.mxu0 %v4843_v23 }
  0xaf   : > { %4299 = vmatmul.mubr.bf16.gmra.mxu0 %v4844_v24 }
  0xb0   : > { %4302 = vmatprep.mubr.bf16.mxu0 %v4845_v25 }
  0xb7   : > { %4303 = vmatmul.mubr.bf16.gmra.mxu0 %v4846_v26 }
  0xb8   : > { %4306 = vmatprep.mubr.bf16.mxu0 %v4847_v27 }
  0xbf   : > { %4307 = vmatmul.mubr.bf16.gmra.mxu0 %v4848_v28 }
  0xc0   : > { %4310 = vmatprep.mubr.bf16.mxu0 %v4849_v29 }
  0xc7   : > { %4311 = vmatmul.mubr.bf16.gmra.mxu0 %v4850_v30 }
  0xc8   : > { %4314 = vmatprep.mubr.bf16.mxu0 %v4851_v31 }
  0xcf   : > { %4315 = vmatmul.mubr.bf16.gmra.mxu0 %v4852_v33 }
  0xd0   : > { %4318 = vmatprep.mubr.bf16.mxu0 %v4853_v35 }
  0xd7   : > { %4319 = vmatmul.mubr.bf16.gmra.mxu0 %v4854_v37 }
  0xd8   : > { %4322 = vmatprep.mubr.bf16.mxu0 %v4855_v38 }
  0xdf   : > { %4323 = vmatmul.mubr.bf16.gmra.mxu0 %v4856_v39 }
  0xe0   : > { %4326 = vmatprep.mubr.bf16.mxu0 %v4857_v40 }
  0xe7   : > { %4327 = vmatmul.mubr.bf16.gmra.mxu0 %v4858_v41 }
  0xe8   : > { %4330 = vmatprep.mubr.bf16.mxu0 %v4859_v42 }
  0xef   : > { %4331 = vmatmul.mubr.bf16.gmra.mxu0 %v4860_v43 }
  0xf0   : > { %4334 = vmatprep.mubr.bf16.mxu0 %v4861_v44 }
  0xf7   : > { %4335 = vmatmul.mubr.bf16.gmra.mxu0 %v4862_v45 }
  0xf8   : > { %4338 = vmatprep.mubr.bf16.mxu0 %v4863_v46 }
  0xff   : > { %4339 = vmatmul.mubr.bf16.gmra.mxu0 %v4864_v47 }
 0x147   : > { %v4280_v51 = vpop.f32.mrf.mxu0 }
 0x148   : > { %v633_v57 = vadd.f32 %v4280_v51, %v5325_v53 }
 0x149   : > { %v624_v52 = vpop.f32.mrf.mxu0 }
 0x14a   : > { %v625_v55 = vadd.f32 %v5325_v53, %v624_v52  ;;  %v881_v2 = vmax.f32 %v633_v57, 0.0 }
 0x14b   : > { %v4281_v54 = vpop.f32.mrf.mxu0 }
 0x14c   : > { %v636_v56 = vadd.f32 %v4281_v54, %v5325_v53  ;;  %v879_v0 = vmax.f32 %v625_v55, 0.0 }
 0x14d   : > { %v627_v58 = vpop.f32.mrf.mxu0 }
 0x14e   : > { %v628_v61 = vadd.f32 %v5325_v53, %v627_v58  ;;  %v882_v62 = vmax.f32 %v636_v56, 0.0 }
 0x14f   : > { %v4284_v63 = vpop.f32.mrf.mxu0 }
 0x150   : > { %v880_v1 = vmax.f32 %v628_v61, 0.0  ;;  %v944_v6 = vpack.c.bf16 %v882_v62, %v881_v2  ;;  %v649_v10 = vadd.f32 %v4284_v63, %v5325_v53 }
 0x151   : > { %v640_v3 = vpop.f32.mrf.mxu0 }
 0x152   : > { %v943_v5 = vpack.c.bf16 %v880_v1, %v879_v0  ;;  %v641_v8 = vadd.f32 %v5325_v53, %v640_v3  ;;  %v885_v18 = vmax.f32 %v649_v10, 0.0 }
 0x153   : > { %v4285_v7 = vpop.f32.mrf.mxu0 }
 0x154   : > { %v652_v9 = vadd.f32 %v4285_v7, %v5325_v53  ;;  %4358 = vmatprep.mubr.bf16.mxu1 %v943_v5  ;;  %v883_v16 = vmax.f32 %v641_v8, 0.0 }
 0x155   : > { %v643_v11 = vpop.f32.mrf.mxu0  ;;  %4359 = vmatmul.mubr.bf16.vlgmr.msra.gmra.mxu1 %v944_v6 }
 0x156   : > { %v644_v13 = vadd.f32 %v5325_v53, %v643_v11  ;;  %v886_v14 = vmax.f32 %v652_v9, 0.0 }
 0x157   : > { %v4288_v15 = vpop.f32.mrf.mxu0 }
 0x158   : > { %v884_v17 = vmax.f32 %v644_v13, 0.0  ;;  %v946_v22 = vpack.c.bf16 %v886_v14, %v885_v18  ;;  %v665_v26 = vadd.f32 %v4288_v15, %v5325_v53 }
 0x159   : > { %v656_v19 = vpop.f32.mrf.mxu0 }
 0x15a   : > { %v945_v21 = vpack.c.bf16 %v884_v17, %v883_v16  ;;  %v657_v24 = vadd.f32 %v5325_v53, %v656_v19  ;;  %v889_v33 = vmax.f32 %v665_v26, 0.0 }
 0x15b   : > { %v4289_v23 = vpop.f32.mrf.mxu0 }
 0x15c   : > { %v668_v25 = vadd.f32 %v4289_v23, %v5325_v53  ;;  %4362 = vmatprep.mubr.bf16.mxu1 %v945_v21  ;;  %v887_v31 = vmax.f32 %v657_v24, 0.0 }
 0x15d   : > { %v659_v27 = vpop.f32.mrf.mxu0  ;;  %4363 = vmatmul.mubr.bf16.gmra.mxu1 %v946_v22 }
 0x15e   : > { %v660_v28 = vadd.f32 %v5325_v53, %v659_v27  ;;  %v890_v29 = vmax.f32 %v668_v25, 0.0 }
 0x15f   : > { %v4292_v30 = vpop.f32.mrf.mxu0 }
 0x160   : > { %v888_v32 = vmax.f32 %v660_v28, 0.0  ;;  %v948_v36 = vpack.c.bf16 %v890_v29, %v889_v33  ;;  %v681_v40 = vadd.f32 %v4292_v30, %v5325_v53 }
 0x161   : > { %v672_v34 = vpop.f32.mrf.mxu0 }
 0x162   : > { %v947_v35 = vpack.c.bf16 %v888_v32, %v887_v31  ;;  %v673_v38 = vadd.f32 %v5325_v53, %v672_v34  ;;  %v893_v47 = vmax.f32 %v681_v40, 0.0 }
 0x163   : > { %v4293_v37 = vpop.f32.mrf.mxu0 }
 0x164   : > { %v684_v39 = vadd.f32 %v4293_v37, %v5325_v53  ;;  %4366 = vmatprep.mubr.bf16.mxu1 %v947_v35  ;;  %v891_v45 = vmax.f32 %v673_v38, 0.0 }
 0x165   : > { %v675_v41 = vpop.f32.mrf.mxu0  ;;  %4367 = vmatmul.mubr.bf16.gmra.mxu1 %v948_v36 }
 0x166   : > { %v676_v42 = vadd.f32 %v5325_v53, %v675_v41  ;;  %v894_v43 = vmax.f32 %v684_v39, 0.0 }
 0x167   : > { %v4296_v44 = vpop.f32.mrf.mxu0 }
 0x168   : > { %v892_v46 = vmax.f32 %v676_v42, 0.0  ;;  %v950_v50 = vpack.c.bf16 %v894_v43, %v893_v47  ;;  %v697_v55 = vadd.f32 %v4296_v44, %v5325_v53 }
 0x169   : > { %v688_v48 = vpop.f32.mrf.mxu0 }
 0x16a   : > { %v949_v49 = vpack.c.bf16 %v892_v46, %v891_v45  ;;  %v689_v52 = vadd.f32 %v5325_v53, %v688_v48  ;;  %v897_v62 = vmax.f32 %v697_v55, 0.0 }
 0x16b   : > { %v4297_v51 = vpop.f32.mrf.mxu0 }
 0x16c   : > { %v700_v54 = vadd.f32 %v4297_v51, %v5325_v53  ;;  %4370 = vmatprep.mubr.bf16.mxu1 %v949_v49  ;;  %v895_v60 = vmax.f32 %v689_v52, 0.0 }
 0x16d   : > { %v691_v56 = vpop.f32.mrf.mxu0  ;;  %4371 = vmatmul.mubr.bf16.gmra.mxu1 %v950_v50 }
 0x16e   : > { %v692_v57 = vadd.f32 %v5325_v53, %v691_v56  ;;  %v898_v58 = vmax.f32 %v700_v54, 0.0 }
 0x16f   : > { %v4300_v59 = vpop.f32.mrf.mxu0 }
 0x170   : > { %v896_v61 = vmax.f32 %v692_v57, 0.0  ;;  %v952_v1 = vpack.c.bf16 %v898_v58, %v897_v62  ;;  %v713_v5 = vadd.f32 %v4300_v59, %v5325_v53 }
 0x171   : > { %v704_v63 = vpop.f32.mrf.mxu0 }
 0x172   : > { %v951_v0 = vpack.c.bf16 %v896_v61, %v895_v60  ;;  %v705_v3 = vadd.f32 %v5325_v53, %v704_v63  ;;  %v901_v12 = vmax.f32 %v713_v5, 0.0 }
 0x173   : > { %v4301_v2 = vpop.f32.mrf.mxu0 }
 0x174   : > { %v716_v4 = vadd.f32 %v4301_v2, %v5325_v53  ;;  %4374 = vmatprep.mubr.bf16.mxu1 %v951_v0  ;;  %v899_v10 = vmax.f32 %v705_v3, 0.0 }
 0x175   : > { %v707_v6 = vpop.f32.mrf.mxu0  ;;  %4375 = vmatmul.mubr.bf16.gmra.mxu1 %v952_v1 }
 0x176   : > { %v708_v7 = vadd.f32 %v5325_v53, %v707_v6  ;;  %v902_v8 = vmax.f32 %v716_v4, 0.0 }
 0x177   : > { %v4304_v9 = vpop.f32.mrf.mxu0 }
 0x178   : > { %v900_v11 = vmax.f32 %v708_v7, 0.0  ;;  %v954_v15 = vpack.c.bf16 %v902_v8, %v901_v12  ;;  %v729_v19 = vadd.f32 %v4304_v9, %v5325_v53 }
 0x179   : > { %v720_v13 = vpop.f32.mrf.mxu0 }
 0x17a   : > { %v953_v14 = vpack.c.bf16 %v900_v11, %v899_v10  ;;  %v721_v17 = vadd.f32 %v5325_v53, %v720_v13  ;;  %v905_v26 = vmax.f32 %v729_v19, 0.0 }
 0x17b   : > { %v4305_v16 = vpop.f32.mrf.mxu0 }
 0x17c   : > { %v732_v18 = vadd.f32 %v4305_v16, %v5325_v53  ;;  %4378 = vmatprep.mubr.bf16.mxu1 %v953_v14  ;;  %v903_v24 = vmax.f32 %v721_v17, 0.0 }
 0x17d   : > { %v723_v20 = vpop.f32.mrf.mxu0  ;;  %4379 = vmatmul.mubr.bf16.gmra.mxu1 %v954_v15 }
 0x17e   : > { %v724_v21 = vadd.f32 %v5325_v53, %v723_v20  ;;  %v906_v22 = vmax.f32 %v732_v18, 0.0 }
 0x17f   : > { %v4308_v23 = vpop.f32.mrf.mxu0 }
 0x180   : > { %v904_v25 = vmax.f32 %v724_v21, 0.0  ;;  %v956_v29 = vpack.c.bf16 %v906_v22, %v905_v26  ;;  %v745_v33 = vadd.f32 %v4308_v23, %v5325_v53 }
 0x181   : > { %v736_v27 = vpop.f32.mrf.mxu0 }
 0x182   : > { %v955_v28 = vpack.c.bf16 %v904_v25, %v903_v24  ;;  %v737_v31 = vadd.f32 %v5325_v53, %v736_v27  ;;  %v909_v40 = vmax.f32 %v745_v33, 0.0 }
 0x183   : > { %v4309_v30 = vpop.f32.mrf.mxu0 }
 0x184   : > { %v748_v32 = vadd.f32 %v4309_v30, %v5325_v53  ;;  %4382 = vmatprep.mubr.bf16.mxu1 %v955_v28  ;;  %v907_v38 = vmax.f32 %v737_v31, 0.0 }
 0x185   : > { %v739_v34 = vpop.f32.mrf.mxu0  ;;  %4383 = vmatmul.mubr.bf16.gmra.mxu1 %v956_v29 }
 0x186   : > { %v740_v35 = vadd.f32 %v5325_v53, %v739_v34  ;;  %v910_v36 = vmax.f32 %v748_v32, 0.0 }
 0x187   : > { %v4312_v37 = vpop.f32.mrf.mxu0 }
 0x188   : > { %v908_v39 = vmax.f32 %v740_v35, 0.0  ;;  %v958_v43 = vpack.c.bf16 %v910_v36, %v909_v40  ;;  %v761_v47 = vadd.f32 %v4312_v37, %v5325_v53 }
 0x189   : > { %v752_v41 = vpop.f32.mrf.mxu0 }
 0x18a   : > { %v957_v42 = vpack.c.bf16 %v908_v39, %v907_v38  ;;  %v753_v45 = vadd.f32 %v5325_v53, %v752_v41  ;;  %v913_v55 = vmax.f32 %v761_v47, 0.0 }
 0x18b   : > { %v4313_v44 = vpop.f32.mrf.mxu0 }
 0x18c   : > { %v764_v46 = vadd.f32 %v4313_v44, %v5325_v53  ;;  %4386 = vmatprep.mubr.bf16.mxu1 %v957_v42  ;;  %v911_v52 = vmax.f32 %v753_v45, 0.0 }
 0x18d   : > { %v755_v48 = vpop.f32.mrf.mxu0  ;;  %4387 = vmatmul.mubr.bf16.gmra.mxu1 %v958_v43 }
 0x18e   : > { %v756_v49 = vadd.f32 %v5325_v53, %v755_v48  ;;  %v914_v50 = vmax.f32 %v764_v46, 0.0 }
 0x18f   : > { %v4316_v51 = vpop.f32.mrf.mxu0 }
 0x190   : > { %v912_v54 = vmax.f32 %v756_v49, 0.0  ;;  %v960_v58 = vpack.c.bf16 %v914_v50, %v913_v55  ;;  %v777_v62 = vadd.f32 %v4316_v51, %v5325_v53 }
 0x191   : > { %v768_v56 = vpop.f32.mrf.mxu0 }
 0x192   : > { %v959_v57 = vpack.c.bf16 %v912_v54, %v911_v52  ;;  %v769_v60 = vadd.f32 %v5325_v53, %v768_v56  ;;  %v917_v5 = vmax.f32 %v777_v62, 0.0 }
 0x193   : > { %v4317_v59 = vpop.f32.mrf.mxu0 }
 0x194   : > { %v780_v61 = vadd.f32 %v4317_v59, %v5325_v53  ;;  %4390 = vmatprep.mubr.bf16.mxu1 %v959_v57  ;;  %v915_v3 = vmax.f32 %v769_v60, 0.0 }
 0x195   : > { %v771_v63 = vpop.f32.mrf.mxu0  ;;  %4391 = vmatmul.mubr.bf16.gmra.mxu1 %v960_v58 }
 0x196   : > { %v772_v0 = vadd.f32 %v5325_v53, %v771_v63  ;;  %v918_v1 = vmax.f32 %v780_v61, 0.0 }
 0x197   : > { %v4320_v2 = vpop.f32.mrf.mxu0 }
 0x198   : > { %v916_v4 = vmax.f32 %v772_v0, 0.0  ;;  %v962_v8 = vpack.c.bf16 %v918_v1, %v917_v5  ;;  %v793_v12 = vadd.f32 %v4320_v2, %v5325_v53 }
 0x199   : > { %v784_v6 = vpop.f32.mrf.mxu0 }
 0x19a   : > { %v961_v7 = vpack.c.bf16 %v916_v4, %v915_v3  ;;  %v785_v10 = vadd.f32 %v5325_v53, %v784_v6  ;;  %v921_v19 = vmax.f32 %v793_v12, 0.0 }
 0x19b   : > { %v4321_v9 = vpop.f32.mrf.mxu0 }
 0x19c   : > { %v796_v11 = vadd.f32 %v4321_v9, %v5325_v53  ;;  %4394 = vmatprep.mubr.bf16.mxu1 %v961_v7  ;;  %v919_v17 = vmax.f32 %v785_v10, 0.0 }
 0x19d   : > { %v787_v13 = vpop.f32.mrf.mxu0  ;;  %4395 = vmatmul.mubr.bf16.gmra.mxu1 %v962_v8 }
 0x19e   : > { %v788_v14 = vadd.f32 %v5325_v53, %v787_v13  ;;  %v922_v15 = vmax.f32 %v796_v11, 0.0 }
 0x19f   : > { %v4324_v16 = vpop.f32.mrf.mxu0 }
 0x1a0   : > { %v920_v18 = vmax.f32 %v788_v14, 0.0  ;;  %v964_v22 = vpack.c.bf16 %v922_v15, %v921_v19  ;;  %v809_v26 = vadd.f32 %v4324_v16, %v5325_v53 }
 0x1a1   : > { %v800_v20 = vpop.f32.mrf.mxu0 }
 0x1a2   : > { %v963_v21 = vpack.c.bf16 %v920_v18, %v919_v17  ;;  %v801_v24 = vadd.f32 %v5325_v53, %v800_v20  ;;  %v925_v33 = vmax.f32 %v809_v26, 0.0 }
 0x1a3   : > { %v4325_v23 = vpop.f32.mrf.mxu0 }
 0x1a4   : > { %v812_v25 = vadd.f32 %v4325_v23, %v5325_v53  ;;  %4398 = vmatprep.mubr.bf16.mxu1 %v963_v21  ;;  %v923_v31 = vmax.f32 %v801_v24, 0.0 }
 0x1a5   : > { %v803_v27 = vpop.f32.mrf.mxu0  ;;  %4399 = vmatmul.mubr.bf16.gmra.mxu1 %v964_v22 }
 0x1a6   : > { %v804_v28 = vadd.f32 %v5325_v53, %v803_v27  ;;  %v926_v29 = vmax.f32 %v812_v25, 0.0 }
 0x1a7   : > { %v4328_v30 = vpop.f32.mrf.mxu0 }
 0x1a8   : > { %v924_v32 = vmax.f32 %v804_v28, 0.0  ;;  %v966_v36 = vpack.c.bf16 %v926_v29, %v925_v33  ;;  %v825_v40 = vadd.f32 %v4328_v30, %v5325_v53  ;;  %v4881_v28 = vld [vmem:[#allocation5 + $0xf8] sm:$0xff]   ;;  %v4882_v29 = vld [vmem:[#allocation5 + $0xf0] sm:$0xff]   ;;  %v4883_v30 = vld [vmem:[#allocation5 + $0xe8] sm:$0xff]  }
 0x1a9   : > { %v816_v34 = vpop.f32.mrf.mxu0  ;;  %4502 = vmatprep.subr.bf16.mxu1 %v4881_v28 }
 0x1aa   : > { %v965_v35 = vpack.c.bf16 %v924_v32, %v923_v31  ;;  %v817_v38 = vadd.f32 %v5325_v53, %v816_v34  ;;  %v929_v47 = vmax.f32 %v825_v40, 0.0  ;;  %4503 = vmatpush3.bf16.msra.mxu1 %v4881_v28 }
 0x1ab   : > { %v4329_v37 = vpop.f32.mrf.mxu0  ;;  %4504 = vmatprep.subr.bf16.mxu1 %v4882_v29 }
 0x1ac   : > { %v828_v39 = vadd.f32 %v4329_v37, %v5325_v53  ;;  %4402 = vmatprep.mubr.bf16.mxu1 %v965_v35  ;;  %v927_v45 = vmax.f32 %v817_v38, 0.0  ;;  %v4884_v38 = vld [vmem:[#allocation5 + $0xe0] sm:$0xff]  }
 0x1ad   : > { %v819_v41 = vpop.f32.mrf.mxu0  ;;  %4403 = vmatmul.mubr.bf16.gmra.mxu1 %v966_v36 }
 0x1ae   : > { %v820_v42 = vadd.f32 %v5325_v53, %v819_v41  ;;  %v930_v43 = vmax.f32 %v828_v39, 0.0  ;;  %4505 = vmatpush3.bf16.msra.mxu1 %v4882_v29  ;;  %v4885_v39 = vld [vmem:[#allocation5 + $0xd8] sm:$0xff]  }
 0x1af   : > { %v4332_v44 = vpop.f32.mrf.mxu0  ;;  %4506 = vmatprep.subr.bf16.mxu1 %v4883_v30 }
 0x1b0   : > { %v928_v46 = vmax.f32 %v820_v42, 0.0  ;;  %v968_v50 = vpack.c.bf16 %v930_v43, %v929_v47  ;;  %v841_v55 = vadd.f32 %v4332_v44, %v5325_v53  ;;  %v4886_v47 = vld [vmem:[#allocation5 + $0xd0] sm:$0xff]  }
 0x1b1   : > { %v832_v48 = vpop.f32.mrf.mxu0 }
 0x1b2   : > { %v967_v49 = vpack.c.bf16 %v928_v46, %v927_v45  ;;  %v833_v52 = vadd.f32 %v5325_v53, %v832_v48  ;;  %v933_v62 = vmax.f32 %v841_v55, 0.0  ;;  %4507 = vmatpush3.bf16.msra.mxu1 %v4883_v30 }
 0x1b3   : > { %v4333_v51 = vpop.f32.mrf.mxu0  ;;  %4508 = vmatprep.subr.bf16.mxu1 %v4884_v38 }
 0x1b4   : > { %v844_v54 = vadd.f32 %v4333_v51, %v5325_v53  ;;  %4406 = vmatprep.mubr.bf16.mxu1 %v967_v49  ;;  %v931_v60 = vmax.f32 %v833_v52, 0.0 }
 0x1b5   : > { %v835_v56 = vpop.f32.mrf.mxu0  ;;  %4407 = vmatmul.mubr.bf16.gmra.mxu1 %v968_v50 }
 0x1b6   : > { %v836_v57 = vadd.f32 %v5325_v53, %v835_v56  ;;  %v934_v58 = vmax.f32 %v844_v54, 0.0  ;;  %4509 = vmatpush3.bf16.msra.mxu1 %v4884_v38  ;;  %v4887_v56 = vld [vmem:[#allocation5 + $0xc8] sm:$0xff]  }
 0x1b7   : > { %v4336_v59 = vpop.f32.mrf.mxu0  ;;  %4510 = vmatprep.subr.bf16.mxu1 %v4885_v39 }
 0x1b8   : > { %v932_v61 = vmax.f32 %v836_v57, 0.0  ;;  %v970_v1 = vpack.c.bf16 %v934_v58, %v933_v62  ;;  %v857_v5 = vadd.f32 %v4336_v59, %v5325_v53 }
 0x1b9   : > { %v848_v63 = vpop.f32.mrf.mxu0 }
 0x1ba   : > { %v969_v0 = vpack.c.bf16 %v932_v61, %v931_v60  ;;  %v849_v3 = vadd.f32 %v5325_v53, %v848_v63  ;;  %v937_v12 = vmax.f32 %v857_v5, 0.0  ;;  %4511 = vmatpush3.bf16.msra.mxu1 %v4885_v39 }
 0x1bb   : > { %v4337_v2 = vpop.f32.mrf.mxu0  ;;  %4512 = vmatprep.subr.bf16.mxu1 %v4886_v47 }
 0x1bc   : > { %v860_v4 = vadd.f32 %v4337_v2, %v5325_v53  ;;  %4410 = vmatprep.mubr.bf16.mxu1 %v969_v0  ;;  %v935_v10 = vmax.f32 %v849_v3, 0.0  ;;  %v4888_v0 = vld [vmem:[#allocation5 + $0xc0] sm:$0xff]  }
 0x1bd   : > { %v851_v6 = vpop.f32.mrf.mxu0  ;;  %4411 = vmatmul.mubr.bf16.gmra.mxu1 %v970_v1 }
 0x1be   : > { %v852_v7 = vadd.f32 %v5325_v53, %v851_v6  ;;  %v938_v8 = vmax.f32 %v860_v4, 0.0  ;;  %4513 = vmatpush3.bf16.msra.mxu1 %v4886_v47 }
 0x1bf   : > { %v4340_v9 = vpop.f32.mrf.mxu0  ;;  %4514 = vmatprep.subr.bf16.mxu1 %v4887_v56 }
 0x1c0   : > { %v936_v11 = vmax.f32 %v852_v7, 0.0  ;;  %v972_v15 = vpack.c.bf16 %v938_v8, %v937_v12  ;;  %v873_v19 = vadd.f32 %v4340_v9, %v5325_v53 }
 0x1c1   : > { %v864_v13 = vpop.f32.mrf.mxu0 }
 0x1c2   : > { %v971_v14 = vpack.c.bf16 %v936_v11, %v935_v10  ;;  %v865_v17 = vadd.f32 %v5325_v53, %v864_v13  ;;  %v941_v25 = vmax.f32 %v873_v19, 0.0  ;;  %4515 = vmatpush3.bf16.msra.mxu1 %v4887_v56 }
 0x1c3   : > { %v4341_v16 = vpop.f32.mrf.mxu0  ;;  %4516 = vmatprep.subr.bf16.mxu1 %v4888_v0 }
 0x1c4   : > { %v876_v18 = vadd.f32 %v4341_v16, %v5325_v53  ;;  %4414 = vmatprep.mubr.bf16.mxu1 %v971_v14  ;;  %v939_v23 = vmax.f32 %v865_v17, 0.0 }
 0x1c5   : > { %v867_v20 = vpop.f32.mrf.mxu0  ;;  %4415 = vmatmul.mubr.bf16.gmra.mxu1 %v972_v15 }
 0x1c6   : > { %v868_v21 = vadd.f32 %v5325_v53, %v867_v20  ;;  %v942_v22 = vmax.f32 %v876_v18, 0.0  ;;  %v5391_v53 = vld [vmem:[#allocation7 + $0x1] ss:$0 sm:$0xff]  ;;  %4517 = vmatpush3.bf16.msra.mxu1 %v4888_v0 }
 0x1c8   : > { %v940_v24 = vmax.f32 %v868_v21, 0.0  ;;  %v974_v27 = vpack.c.bf16 %v942_v22, %v941_v25 }
 0x1ca   : > { %v973_v26 = vpack.c.bf16 %v940_v24, %v939_v23 }
 0x1cc   : > { %4418 = vmatprep.mubr.bf16.mxu1 %v973_v26 }
 0x1cd   : > { %4419 = vmatmul.mubr.bf16.gmra.mxu1 %v974_v27 }
 0x215   : > { %v4360_v31 = vpop.f32.mrf.mxu1 }
 0x216   : > { %v1091_v36 = vadd.f32 %v4360_v31, %v5391_v53 }
 0x217   : > { %v1082_v32 = vpop.f32.mrf.mxu1 }
 0x218   : > { %v1083_v34 = vadd.f32 %v5391_v53, %v1082_v32  ;;  %v1339_v45 = vmax.f32 %v1091_v36, 0.0 }
 0x219   : > { %v4361_v33 = vpop.f32.mrf.mxu1 }
 0x21a   : > { %v1094_v35 = vadd.f32 %v4361_v33, %v5391_v53  ;;  %v1337_v43 = vmax.f32 %v1083_v34, 0.0 }
 0x21b   : > { %v1085_v37 = vpop.f32.mrf.mxu1 }
 0x21c   : > { %v1086_v40 = vadd.f32 %v5391_v53, %v1085_v37  ;;  %v1340_v41 = vmax.f32 %v1094_v35, 0.0 }
 0x21d   : > { %v4364_v42 = vpop.f32.mrf.mxu1 }
 0x21e   : > { %v1338_v44 = vmax.f32 %v1086_v40, 0.0  ;;  %v1402_v49 = vpack.c.bf16 %v1340_v41, %v1339_v45  ;;  %v1107_v54 = vadd.f32 %v4364_v42, %v5391_v53 }
 0x21f   : > { %v1098_v46 = vpop.f32.mrf.mxu1 }
 0x220   : > { %v1401_v48 = vpack.c.bf16 %v1338_v44, %v1337_v43  ;;  %v1099_v51 = vadd.f32 %v5391_v53, %v1098_v46  ;;  %v1343_v62 = vmax.f32 %v1107_v54, 0.0 }
 0x221   : > { %v4365_v50 = vpop.f32.mrf.mxu1 }
 0x222   : > { %v1110_v52 = vadd.f32 %v4365_v50, %v5391_v53  ;;  %4438 = vmatprep.mubr.bf16.mxu0 %v1401_v48  ;;  %v1341_v60 = vmax.f32 %v1099_v51, 0.0 }
 0x223   : > { %v1101_v55 = vpop.f32.mrf.mxu1  ;;  %4439 = vmatmul.mubr.bf16.vlgmr.msra.gmra.mxu0 %v1402_v49 }
 0x224   : > { %v1102_v57 = vadd.f32 %v5391_v53, %v1101_v55  ;;  %v1344_v58 = vmax.f32 %v1110_v52, 0.0 }
 0x225   : > { %v4368_v59 = vpop.f32.mrf.mxu1 }
 0x226   : > { %v1342_v61 = vmax.f32 %v1102_v57, 0.0  ;;  %v1404_v2 = vpack.c.bf16 %v1344_v58, %v1343_v62  ;;  %v1123_v6 = vadd.f32 %v4368_v59, %v5391_v53 }
 0x227   : > { %v1114_v63 = vpop.f32.mrf.mxu1 }
 0x228   : > { %v1403_v1 = vpack.c.bf16 %v1342_v61, %v1341_v60  ;;  %v1115_v4 = vadd.f32 %v5391_v53, %v1114_v63  ;;  %v1347_v13 = vmax.f32 %v1123_v6, 0.0 }
 0x229   : > { %v4369_v3 = vpop.f32.mrf.mxu1 }
 0x22a   : > { %v1126_v5 = vadd.f32 %v4369_v3, %v5391_v53  ;;  %4442 = vmatprep.mubr.bf16.mxu0 %v1403_v1  ;;  %v1345_v11 = vmax.f32 %v1115_v4, 0.0 }
 0x22b   : > { %v1117_v7 = vpop.f32.mrf.mxu1  ;;  %4443 = vmatmul.mubr.bf16.gmra.mxu0 %v1404_v2 }
 0x22c   : > { %v1118_v8 = vadd.f32 %v5391_v53, %v1117_v7  ;;  %v1348_v9 = vmax.f32 %v1126_v5, 0.0 }
 0x22d   : > { %v4372_v10 = vpop.f32.mrf.mxu1 }
 0x22e   : > { %v1346_v12 = vmax.f32 %v1118_v8, 0.0  ;;  %v1406_v16 = vpack.c.bf16 %v1348_v9, %v1347_v13  ;;  %v1139_v20 = vadd.f32 %v4372_v10, %v5391_v53 }
 0x22f   : > { %v1130_v14 = vpop.f32.mrf.mxu1 }
 0x230   : > { %v1405_v15 = vpack.c.bf16 %v1346_v12, %v1345_v11  ;;  %v1131_v18 = vadd.f32 %v5391_v53, %v1130_v14  ;;  %v1351_v27 = vmax.f32 %v1139_v20, 0.0 }
 0x231   : > { %v4373_v17 = vpop.f32.mrf.mxu1 }
 0x232   : > { %v1142_v19 = vadd.f32 %v4373_v17, %v5391_v53  ;;  %4446 = vmatprep.mubr.bf16.mxu0 %v1405_v15  ;;  %v1349_v25 = vmax.f32 %v1131_v18, 0.0 }
 0x233   : > { %v1133_v21 = vpop.f32.mrf.mxu1  ;;  %4447 = vmatmul.mubr.bf16.gmra.mxu0 %v1406_v16 }
 0x234   : > { %v1134_v22 = vadd.f32 %v5391_v53, %v1133_v21  ;;  %v1352_v23 = vmax.f32 %v1142_v19, 0.0 }
 0x235   : > { %v4376_v24 = vpop.f32.mrf.mxu1 }
 0x236   : > { %v1350_v26 = vmax.f32 %v1134_v22, 0.0  ;;  %v1408_v30 = vpack.c.bf16 %v1352_v23, %v1351_v27  ;;  %v1155_v34 = vadd.f32 %v4376_v24, %v5391_v53 }
 0x237   : > { %v1146_v28 = vpop.f32.mrf.mxu1 }
 0x238   : > { %v1407_v29 = vpack.c.bf16 %v1350_v26, %v1349_v25  ;;  %v1147_v32 = vadd.f32 %v5391_v53, %v1146_v28  ;;  %v1355_v41 = vmax.f32 %v1155_v34, 0.0 }
 0x239   : > { %v4377_v31 = vpop.f32.mrf.mxu1 }
 0x23a   : > { %v1158_v33 = vadd.f32 %v4377_v31, %v5391_v53  ;;  %4450 = vmatprep.mubr.bf16.mxu0 %v1407_v29  ;;  %v1353_v39 = vmax.f32 %v1147_v32, 0.0 }
 0x23b   : > { %v1149_v35 = vpop.f32.mrf.mxu1  ;;  %4451 = vmatmul.mubr.bf16.gmra.mxu0 %v1408_v30 }
 0x23c   : > { %v1150_v36 = vadd.f32 %v5391_v53, %v1149_v35  ;;  %v1356_v37 = vmax.f32 %v1158_v33, 0.0 }
 0x23d   : > { %v4380_v38 = vpop.f32.mrf.mxu1 }
 0x23e   : > { %v1354_v40 = vmax.f32 %v1150_v36, 0.0  ;;  %v1410_v44 = vpack.c.bf16 %v1356_v37, %v1355_v41  ;;  %v1171_v48 = vadd.f32 %v4380_v38, %v5391_v53 }
 0x23f   : > { %v1162_v42 = vpop.f32.mrf.mxu1 }
 0x240   : > { %v1409_v43 = vpack.c.bf16 %v1354_v40, %v1353_v39  ;;  %v1163_v46 = vadd.f32 %v5391_v53, %v1162_v42  ;;  %v1359_v56 = vmax.f32 %v1171_v48, 0.0 }
 0x241   : > { %v4381_v45 = vpop.f32.mrf.mxu1 }
 0x242   : > { %v1174_v47 = vadd.f32 %v4381_v45, %v5391_v53  ;;  %4454 = vmatprep.mubr.bf16.mxu0 %v1409_v43  ;;  %v1357_v54 = vmax.f32 %v1163_v46, 0.0 }
 0x243   : > { %v1165_v49 = vpop.f32.mrf.mxu1  ;;  %4455 = vmatmul.mubr.bf16.gmra.mxu0 %v1410_v44 }
 0x244   : > { %v1166_v50 = vadd.f32 %v5391_v53, %v1165_v49  ;;  %v1360_v51 = vmax.f32 %v1174_v47, 0.0 }
 0x245   : > { %v4384_v52 = vpop.f32.mrf.mxu1 }
 0x246   : > { %v1358_v55 = vmax.f32 %v1166_v50, 0.0  ;;  %v1412_v59 = vpack.c.bf16 %v1360_v51, %v1359_v56  ;;  %v1187_v63 = vadd.f32 %v4384_v52, %v5391_v53 }
 0x247   : > { %v1178_v57 = vpop.f32.mrf.mxu1 }
 0x248   : > { %v1411_v58 = vpack.c.bf16 %v1358_v55, %v1357_v54  ;;  %v1179_v61 = vadd.f32 %v5391_v53, %v1178_v57  ;;  %v1363_v6 = vmax.f32 %v1187_v63, 0.0 }
 0x249   : > { %v4385_v60 = vpop.f32.mrf.mxu1 }
 0x24a   : > { %v1190_v62 = vadd.f32 %v4385_v60, %v5391_v53  ;;  %4458 = vmatprep.mubr.bf16.mxu0 %v1411_v58  ;;  %v1361_v4 = vmax.f32 %v1179_v61, 0.0 }
 0x24b   : > { %v1181_v0 = vpop.f32.mrf.mxu1  ;;  %4459 = vmatmul.mubr.bf16.gmra.mxu0 %v1412_v59 }
 0x24c   : > { %v1182_v1 = vadd.f32 %v5391_v53, %v1181_v0  ;;  %v1364_v2 = vmax.f32 %v1190_v62, 0.0 }
 0x24d   : > { %v4388_v3 = vpop.f32.mrf.mxu1 }
 0x24e   : > { %v1362_v5 = vmax.f32 %v1182_v1, 0.0  ;;  %v1414_v9 = vpack.c.bf16 %v1364_v2, %v1363_v6  ;;  %v1203_v13 = vadd.f32 %v4388_v3, %v5391_v53 }
 0x24f   : > { %v1194_v7 = vpop.f32.mrf.mxu1 }
 0x250   : > { %v1413_v8 = vpack.c.bf16 %v1362_v5, %v1361_v4  ;;  %v1195_v11 = vadd.f32 %v5391_v53, %v1194_v7  ;;  %v1367_v20 = vmax.f32 %v1203_v13, 0.0 }
 0x251   : > { %v4389_v10 = vpop.f32.mrf.mxu1 }
 0x252   : > { %v1206_v12 = vadd.f32 %v4389_v10, %v5391_v53  ;;  %4462 = vmatprep.mubr.bf16.mxu0 %v1413_v8  ;;  %v1365_v18 = vmax.f32 %v1195_v11, 0.0 }
 0x253   : > { %v1197_v14 = vpop.f32.mrf.mxu1  ;;  %4463 = vmatmul.mubr.bf16.gmra.mxu0 %v1414_v9 }
 0x254   : > { %v1198_v15 = vadd.f32 %v5391_v53, %v1197_v14  ;;  %v1368_v16 = vmax.f32 %v1206_v12, 0.0 }
 0x255   : > { %v4392_v17 = vpop.f32.mrf.mxu1 }
 0x256   : > { %v1366_v19 = vmax.f32 %v1198_v15, 0.0  ;;  %v1416_v23 = vpack.c.bf16 %v1368_v16, %v1367_v20  ;;  %v1219_v27 = vadd.f32 %v4392_v17, %v5391_v53 }
 0x257   : > { %v1210_v21 = vpop.f32.mrf.mxu1 }
 0x258   : > { %v1415_v22 = vpack.c.bf16 %v1366_v19, %v1365_v18  ;;  %v1211_v25 = vadd.f32 %v5391_v53, %v1210_v21  ;;  %v1371_v34 = vmax.f32 %v1219_v27, 0.0 }
 0x259   : > { %v4393_v24 = vpop.f32.mrf.mxu1 }
 0x25a   : > { %v1222_v26 = vadd.f32 %v4393_v24, %v5391_v53  ;;  %4466 = vmatprep.mubr.bf16.mxu0 %v1415_v22  ;;  %v1369_v32 = vmax.f32 %v1211_v25, 0.0 }
 0x25b   : > { %v1213_v28 = vpop.f32.mrf.mxu1  ;;  %4467 = vmatmul.mubr.bf16.gmra.mxu0 %v1416_v23 }
 0x25c   : > { %v1214_v29 = vadd.f32 %v5391_v53, %v1213_v28  ;;  %v1372_v30 = vmax.f32 %v1222_v26, 0.0 }
 0x25d   : > { %v4396_v31 = vpop.f32.mrf.mxu1 }
 0x25e   : > { %v1370_v33 = vmax.f32 %v1214_v29, 0.0  ;;  %v1418_v37 = vpack.c.bf16 %v1372_v30, %v1371_v34  ;;  %v1235_v41 = vadd.f32 %v4396_v31, %v5391_v53 }
 0x25f   : > { %v1226_v35 = vpop.f32.mrf.mxu1 }
 0x260   : > { %v1417_v36 = vpack.c.bf16 %v1370_v33, %v1369_v32  ;;  %v1227_v39 = vadd.f32 %v5391_v53, %v1226_v35  ;;  %v1375_v48 = vmax.f32 %v1235_v41, 0.0 }
 0x261   : > { %v4397_v38 = vpop.f32.mrf.mxu1 }
 0x262   : > { %v1238_v40 = vadd.f32 %v4397_v38, %v5391_v53  ;;  %4470 = vmatprep.mubr.bf16.mxu0 %v1417_v36  ;;  %v1373_v46 = vmax.f32 %v1227_v39, 0.0 }
 0x263   : > { %v1229_v42 = vpop.f32.mrf.mxu1  ;;  %4471 = vmatmul.mubr.bf16.gmra.mxu0 %v1418_v37 }
 0x264   : > { %v1230_v43 = vadd.f32 %v5391_v53, %v1229_v42  ;;  %v1376_v44 = vmax.f32 %v1238_v40, 0.0 }
 0x265   : > { %v4400_v45 = vpop.f32.mrf.mxu1 }
 0x266   : > { %v1374_v47 = vmax.f32 %v1230_v43, 0.0  ;;  %v1420_v51 = vpack.c.bf16 %v1376_v44, %v1375_v48  ;;  %v1251_v56 = vadd.f32 %v4400_v45, %v5391_v53 }
 0x267   : > { %v1242_v49 = vpop.f32.mrf.mxu1 }
 0x268   : > { %v1419_v50 = vpack.c.bf16 %v1374_v47, %v1373_v46  ;;  %v1243_v54 = vadd.f32 %v5391_v53, %v1242_v49  ;;  %v1379_v63 = vmax.f32 %v1251_v56, 0.0 }
 0x269   : > { %v4401_v52 = vpop.f32.mrf.mxu1 }
 0x26a   : > { %v1254_v55 = vadd.f32 %v4401_v52, %v5391_v53  ;;  %4474 = vmatprep.mubr.bf16.mxu0 %v1419_v50  ;;  %v1377_v61 = vmax.f32 %v1243_v54, 0.0 }
 0x26b   : > { %v1245_v57 = vpop.f32.mrf.mxu1  ;;  %4475 = vmatmul.mubr.bf16.gmra.mxu0 %v1420_v51 }
 0x26c   : > { %v1246_v58 = vadd.f32 %v5391_v53, %v1245_v57  ;;  %v1380_v59 = vmax.f32 %v1254_v55, 0.0 }
 0x26d   : > { %v4404_v60 = vpop.f32.mrf.mxu1 }
 0x26e   : > { %v1378_v62 = vmax.f32 %v1246_v58, 0.0  ;;  %v1422_v2 = vpack.c.bf16 %v1380_v59, %v1379_v63  ;;  %v1267_v6 = vadd.f32 %v4404_v60, %v5391_v53 }
 0x26f   : > { %v1258_v0 = vpop.f32.mrf.mxu1 }
 0x270   : > { %v1421_v1 = vpack.c.bf16 %v1378_v62, %v1377_v61  ;;  %v1259_v4 = vadd.f32 %v5391_v53, %v1258_v0  ;;  %v1383_v13 = vmax.f32 %v1267_v6, 0.0 }
 0x271   : > { %v4405_v3 = vpop.f32.mrf.mxu1 }
 0x272   : > { %v1270_v5 = vadd.f32 %v4405_v3, %v5391_v53  ;;  %4478 = vmatprep.mubr.bf16.mxu0 %v1421_v1  ;;  %v1381_v11 = vmax.f32 %v1259_v4, 0.0 }
 0x273   : > { %v1261_v7 = vpop.f32.mrf.mxu1  ;;  %4479 = vmatmul.mubr.bf16.gmra.mxu0 %v1422_v2 }
 0x274   : > { %v1262_v8 = vadd.f32 %v5391_v53, %v1261_v7  ;;  %v1384_v9 = vmax.f32 %v1270_v5, 0.0 }
 0x275   : > { %v4408_v10 = vpop.f32.mrf.mxu1 }
 0x276   : > { %v1382_v12 = vmax.f32 %v1262_v8, 0.0  ;;  %v1424_v16 = vpack.c.bf16 %v1384_v9, %v1383_v13  ;;  %v1283_v20 = vadd.f32 %v4408_v10, %v5391_v53  ;;  %v4889_v8 = vld [vmem:[#allocation5 + $0x138] sm:$0xff]   ;;  %v4890_v9 = vld [vmem:[#allocation5 + $0x130] sm:$0xff]   ;;  %v4891_v10 = vld [vmem:[#allocation5 + $0x128] sm:$0xff]  }
 0x277   : > { %v1274_v14 = vpop.f32.mrf.mxu1  ;;  %4582 = vmatprep.subr.bf16.mxu0 %v4889_v8 }
 0x278   : > { %v1423_v15 = vpack.c.bf16 %v1382_v12, %v1381_v11  ;;  %v1275_v18 = vadd.f32 %v5391_v53, %v1274_v14  ;;  %v1387_v27 = vmax.f32 %v1283_v20, 0.0  ;;  %4583 = vmatpush3.bf16.msra.mxu0 %v4889_v8 }
 0x279   : > { %v4409_v17 = vpop.f32.mrf.mxu1  ;;  %4584 = vmatprep.subr.bf16.mxu0 %v4890_v9 }
 0x27a   : > { %v1286_v19 = vadd.f32 %v4409_v17, %v5391_v53  ;;  %4482 = vmatprep.mubr.bf16.mxu0 %v1423_v15  ;;  %v1385_v25 = vmax.f32 %v1275_v18, 0.0  ;;  %v4892_v18 = vld [vmem:[#allocation5 + $0x120] sm:$0xff]  }
 0x27b   : > { %v1277_v21 = vpop.f32.mrf.mxu1  ;;  %4483 = vmatmul.mubr.bf16.gmra.mxu0 %v1424_v16 }
 0x27c   : > { %v1278_v22 = vadd.f32 %v5391_v53, %v1277_v21  ;;  %v1388_v23 = vmax.f32 %v1286_v19, 0.0  ;;  %4585 = vmatpush3.bf16.msra.mxu0 %v4890_v9  ;;  %v4893_v19 = vld [vmem:[#allocation5 + $0x118] sm:$0xff]  }
 0x27d   : > { %v4412_v24 = vpop.f32.mrf.mxu1  ;;  %4586 = vmatprep.subr.bf16.mxu0 %v4891_v10 }
 0x27e   : > { %v1386_v26 = vmax.f32 %v1278_v22, 0.0  ;;  %v1426_v30 = vpack.c.bf16 %v1388_v23, %v1387_v27  ;;  %v1299_v34 = vadd.f32 %v4412_v24, %v5391_v53  ;;  %v4894_v27 = vld [vmem:[#allocation5 + $0x110] sm:$0xff]  }
 0x27f   : > { %v1290_v28 = vpop.f32.mrf.mxu1 }
 0x280   : > { %v1425_v29 = vpack.c.bf16 %v1386_v26, %v1385_v25  ;;  %v1291_v32 = vadd.f32 %v5391_v53, %v1290_v28  ;;  %v1391_v41 = vmax.f32 %v1299_v34, 0.0  ;;  %4587 = vmatpush3.bf16.msra.mxu0 %v4891_v10 }
 0x281   : > { %v4413_v31 = vpop.f32.mrf.mxu1  ;;  %4588 = vmatprep.subr.bf16.mxu0 %v4892_v18 }
 0x282   : > { %v1302_v33 = vadd.f32 %v4413_v31, %v5391_v53  ;;  %4486 = vmatprep.mubr.bf16.mxu0 %v1425_v29  ;;  %v1389_v39 = vmax.f32 %v1291_v32, 0.0 }
 0x283   : > { %v1293_v35 = vpop.f32.mrf.mxu1  ;;  %4487 = vmatmul.mubr.bf16.gmra.mxu0 %v1426_v30 }
 0x284   : > { %v1294_v36 = vadd.f32 %v5391_v53, %v1293_v35  ;;  %v1392_v37 = vmax.f32 %v1302_v33, 0.0  ;;  %4589 = vmatpush3.bf16.msra.mxu0 %v4892_v18  ;;  %v4895_v35 = vld [vmem:[#allocation5 + $0x108] sm:$0xff]  }
 0x285   : > { %v4416_v38 = vpop.f32.mrf.mxu1  ;;  %4590 = vmatprep.subr.bf16.mxu0 %v4893_v19 }
 0x286   : > { %v1390_v40 = vmax.f32 %v1294_v36, 0.0  ;;  %v1428_v44 = vpack.c.bf16 %v1392_v37, %v1391_v41  ;;  %v1315_v48 = vadd.f32 %v4416_v38, %v5391_v53 }
 0x287   : > { %v1306_v42 = vpop.f32.mrf.mxu1 }
 0x288   : > { %v1427_v43 = vpack.c.bf16 %v1390_v40, %v1389_v39  ;;  %v1307_v46 = vadd.f32 %v5391_v53, %v1306_v42  ;;  %v1395_v56 = vmax.f32 %v1315_v48, 0.0  ;;  %4591 = vmatpush3.bf16.msra.mxu0 %v4893_v19 }
 0x289   : > { %v4417_v45 = vpop.f32.mrf.mxu1  ;;  %4592 = vmatprep.subr.bf16.mxu0 %v4894_v27 }
 0x28a   : > { %v1318_v47 = vadd.f32 %v4417_v45, %v5391_v53  ;;  %4490 = vmatprep.mubr.bf16.mxu0 %v1427_v43  ;;  %v1393_v54 = vmax.f32 %v1307_v46, 0.0  ;;  %v4896_v43 = vld [vmem:[#allocation5 + $0x100] sm:$0xff]  }
 0x28b   : > { %v1309_v49 = vpop.f32.mrf.mxu1  ;;  %4491 = vmatmul.mubr.bf16.gmra.mxu0 %v1428_v44 }
 0x28c   : > { %v1310_v50 = vadd.f32 %v5391_v53, %v1309_v49  ;;  %v1396_v51 = vmax.f32 %v1318_v47, 0.0  ;;  %4593 = vmatpush3.bf16.msra.mxu0 %v4894_v27 }
 0x28d   : > { %v4420_v52 = vpop.f32.mrf.mxu1  ;;  %4594 = vmatprep.subr.bf16.mxu0 %v4895_v35 }
 0x28e   : > { %v1394_v55 = vmax.f32 %v1310_v50, 0.0  ;;  %v1430_v59 = vpack.c.bf16 %v1396_v51, %v1395_v56  ;;  %v1331_v63 = vadd.f32 %v4420_v52, %v5391_v53 }
 0x28f   : > { %v1322_v57 = vpop.f32.mrf.mxu1 }
 0x290   : > { %v1429_v58 = vpack.c.bf16 %v1394_v55, %v1393_v54  ;;  %v1323_v61 = vadd.f32 %v5391_v53, %v1322_v57  ;;  %v1399_v5 = vmax.f32 %v1331_v63, 0.0  ;;  %4595 = vmatpush3.bf16.msra.mxu0 %v4895_v35 }
 0x291   : > { %v4421_v60 = vpop.f32.mrf.mxu1  ;;  %4596 = vmatprep.subr.bf16.mxu0 %v4896_v43 }
 0x292   : > { %v1334_v62 = vadd.f32 %v4421_v60, %v5391_v53  ;;  %4494 = vmatprep.mubr.bf16.mxu0 %v1429_v58  ;;  %v1397_v3 = vmax.f32 %v1323_v61, 0.0 }
 0x293   : > { %v1325_v0 = vpop.f32.mrf.mxu1  ;;  %4495 = vmatmul.mubr.bf16.gmra.mxu0 %v1430_v59 }
 0x294   : > { %v1326_v1 = vadd.f32 %v5391_v53, %v1325_v0  ;;  %v1400_v2 = vmax.f32 %v1334_v62, 0.0  ;;  %v5457_v53 = vld [vmem:[#allocation7 + $0x2] ss:$0 sm:$0xff]  ;;  %4597 = vmatpush3.bf16.msra.mxu0 %v4896_v43 }
 0x296   : > { %v1398_v4 = vmax.f32 %v1326_v1, 0.0  ;;  %v1432_v7 = vpack.c.bf16 %v1400_v2, %v1399_v5 }
 0x298   : > { %v1431_v6 = vpack.c.bf16 %v1398_v4, %v1397_v3 }
 0x29a   : > { %4498 = vmatprep.mubr.bf16.mxu0 %v1431_v6 }
 0x29b   : > { %4499 = vmatmul.mubr.bf16.gmra.mxu0 %v1432_v7 }
 0x2e3   : > { %v4440_v11 = vpop.f32.mrf.mxu0 }
 0x2e4   : > { %v1549_v16 = vadd.f32 %v4440_v11, %v5457_v53 }
 0x2e5   : > { %v1540_v12 = vpop.f32.mrf.mxu0 }
 0x2e6   : > { %v1541_v14 = vadd.f32 %v5457_v53, %v1540_v12  ;;  %v1797_v25 = vmax.f32 %v1549_v16, 0.0 }
 0x2e7   : > { %v4441_v13 = vpop.f32.mrf.mxu0 }
 0x2e8   : > { %v1552_v15 = vadd.f32 %v4441_v13, %v5457_v53  ;;  %v1795_v23 = vmax.f32 %v1541_v14, 0.0 }
 0x2e9   : > { %v1543_v17 = vpop.f32.mrf.mxu0 }
 0x2ea   : > { %v1544_v20 = vadd.f32 %v5457_v53, %v1543_v17  ;;  %v1798_v21 = vmax.f32 %v1552_v15, 0.0 }
 0x2eb   : > { %v4444_v22 = vpop.f32.mrf.mxu0 }
 0x2ec   : > { %v1796_v24 = vmax.f32 %v1544_v20, 0.0  ;;  %v1860_v29 = vpack.c.bf16 %v1798_v21, %v1797_v25  ;;  %v1565_v33 = vadd.f32 %v4444_v22, %v5457_v53 }
 0x2ed   : > { %v1556_v26 = vpop.f32.mrf.mxu0 }
 0x2ee   : > { %v1859_v28 = vpack.c.bf16 %v1796_v24, %v1795_v23  ;;  %v1557_v31 = vadd.f32 %v5457_v53, %v1556_v26  ;;  %v1801_v41 = vmax.f32 %v1565_v33, 0.0 }
 0x2ef   : > { %v4445_v30 = vpop.f32.mrf.mxu0 }
 0x2f0   : > { %v1568_v32 = vadd.f32 %v4445_v30, %v5457_v53  ;;  %4518 = vmatprep.mubr.bf16.mxu1 %v1859_v28  ;;  %v1799_v39 = vmax.f32 %v1557_v31, 0.0 }
 0x2f1   : > { %v1559_v34 = vpop.f32.mrf.mxu0  ;;  %4519 = vmatmul.mubr.bf16.vlgmr.msra.gmra.mxu1 %v1860_v29 }
 0x2f2   : > { %v1560_v36 = vadd.f32 %v5457_v53, %v1559_v34  ;;  %v1802_v37 = vmax.f32 %v1568_v32, 0.0 }
 0x2f3   : > { %v4448_v38 = vpop.f32.mrf.mxu0 }
 0x2f4   : > { %v1800_v40 = vmax.f32 %v1560_v36, 0.0  ;;  %v1862_v45 = vpack.c.bf16 %v1802_v37, %v1801_v41  ;;  %v1581_v49 = vadd.f32 %v4448_v38, %v5457_v53 }
 0x2f5   : > { %v1572_v42 = vpop.f32.mrf.mxu0 }
 0x2f6   : > { %v1861_v44 = vpack.c.bf16 %v1800_v40, %v1799_v39  ;;  %v1573_v47 = vadd.f32 %v5457_v53, %v1572_v42  ;;  %v1805_v57 = vmax.f32 %v1581_v49, 0.0 }
 0x2f7   : > { %v4449_v46 = vpop.f32.mrf.mxu0 }
 0x2f8   : > { %v1584_v48 = vadd.f32 %v4449_v46, %v5457_v53  ;;  %4522 = vmatprep.mubr.bf16.mxu1 %v1861_v44  ;;  %v1803_v55 = vmax.f32 %v1573_v47, 0.0 }
 0x2f9   : > { %v1575_v50 = vpop.f32.mrf.mxu0  ;;  %4523 = vmatmul.mubr.bf16.gmra.mxu1 %v1862_v45 }
 0x2fa   : > { %v1576_v51 = vadd.f32 %v5457_v53, %v1575_v50  ;;  %v1806_v52 = vmax.f32 %v1584_v48, 0.0 }
 0x2fb   : > { %v4452_v54 = vpop.f32.mrf.mxu0 }
 0x2fc   : > { %v1804_v56 = vmax.f32 %v1576_v51, 0.0  ;;  %v1864_v60 = vpack.c.bf16 %v1806_v52, %v1805_v57  ;;  %v1597_v0 = vadd.f32 %v4452_v54, %v5457_v53 }
 0x2fd   : > { %v1588_v58 = vpop.f32.mrf.mxu0 }
 0x2fe   : > { %v1863_v59 = vpack.c.bf16 %v1804_v56, %v1803_v55  ;;  %v1589_v62 = vadd.f32 %v5457_v53, %v1588_v58  ;;  %v1809_v7 = vmax.f32 %v1597_v0, 0.0 }
 0x2ff   : > { %v4453_v61 = vpop.f32.mrf.mxu0 }
 0x300   : > { %v1600_v63 = vadd.f32 %v4453_v61, %v5457_v53  ;;  %4526 = vmatprep.mubr.bf16.mxu1 %v1863_v59  ;;  %v1807_v5 = vmax.f32 %v1589_v62, 0.0 }
 0x301   : > { %v1591_v1 = vpop.f32.mrf.mxu0  ;;  %4527 = vmatmul.mubr.bf16.gmra.mxu1 %v1864_v60 }
 0x302   : > { %v1592_v2 = vadd.f32 %v5457_v53, %v1591_v1  ;;  %v1810_v3 = vmax.f32 %v1600_v63, 0.0 }
 0x303   : > { %v4456_v4 = vpop.f32.mrf.mxu0 }
 0x304   : > { %v1808_v6 = vmax.f32 %v1592_v2, 0.0  ;;  %v1866_v10 = vpack.c.bf16 %v1810_v3, %v1809_v7  ;;  %v1613_v14 = vadd.f32 %v4456_v4, %v5457_v53 }
 0x305   : > { %v1604_v8 = vpop.f32.mrf.mxu0 }
 0x306   : > { %v1865_v9 = vpack.c.bf16 %v1808_v6, %v1807_v5  ;;  %v1605_v12 = vadd.f32 %v5457_v53, %v1604_v8  ;;  %v1813_v21 = vmax.f32 %v1613_v14, 0.0 }
 0x307   : > { %v4457_v11 = vpop.f32.mrf.mxu0 }
 0x308   : > { %v1616_v13 = vadd.f32 %v4457_v11, %v5457_v53  ;;  %4530 = vmatprep.mubr.bf16.mxu1 %v1865_v9  ;;  %v1811_v19 = vmax.f32 %v1605_v12, 0.0 }
 0x309   : > { %v1607_v15 = vpop.f32.mrf.mxu0  ;;  %4531 = vmatmul.mubr.bf16.gmra.mxu1 %v1866_v10 }
 0x30a   : > { %v1608_v16 = vadd.f32 %v5457_v53, %v1607_v15  ;;  %v1814_v17 = vmax.f32 %v1616_v13, 0.0 }
 0x30b   : > { %v4460_v18 = vpop.f32.mrf.mxu0 }
 0x30c   : > { %v1812_v20 = vmax.f32 %v1608_v16, 0.0  ;;  %v1868_v24 = vpack.c.bf16 %v1814_v17, %v1813_v21  ;;  %v1629_v28 = vadd.f32 %v4460_v18, %v5457_v53 }
 0x30d   : > { %v1620_v22 = vpop.f32.mrf.mxu0 }
 0x30e   : > { %v1867_v23 = vpack.c.bf16 %v1812_v20, %v1811_v19  ;;  %v1621_v26 = vadd.f32 %v5457_v53, %v1620_v22  ;;  %v1817_v35 = vmax.f32 %v1629_v28, 0.0 }
 0x30f   : > { %v4461_v25 = vpop.f32.mrf.mxu0 }
 0x310   : > { %v1632_v27 = vadd.f32 %v4461_v25, %v5457_v53  ;;  %4534 = vmatprep.mubr.bf16.mxu1 %v1867_v23  ;;  %v1815_v33 = vmax.f32 %v1621_v26, 0.0 }
 0x311   : > { %v1623_v29 = vpop.f32.mrf.mxu0  ;;  %4535 = vmatmul.mubr.bf16.gmra.mxu1 %v1868_v24 }
 0x312   : > { %v1624_v30 = vadd.f32 %v5457_v53, %v1623_v29  ;;  %v1818_v31 = vmax.f32 %v1632_v27, 0.0 }
 0x313   : > { %v4464_v32 = vpop.f32.mrf.mxu0 }
 0x314   : > { %v1816_v34 = vmax.f32 %v1624_v30, 0.0  ;;  %v1870_v38 = vpack.c.bf16 %v1818_v31, %v1817_v35  ;;  %v1645_v42 = vadd.f32 %v4464_v32, %v5457_v53 }
 0x315   : > { %v1636_v36 = vpop.f32.mrf.mxu0 }
 0x316   : > { %v1869_v37 = vpack.c.bf16 %v1816_v34, %v1815_v33  ;;  %v1637_v40 = vadd.f32 %v5457_v53, %v1636_v36  ;;  %v1821_v49 = vmax.f32 %v1645_v42, 0.0 }
 0x317   : > { %v4465_v39 = vpop.f32.mrf.mxu0 }
 0x318   : > { %v1648_v41 = vadd.f32 %v4465_v39, %v5457_v53  ;;  %4538 = vmatprep.mubr.bf16.mxu1 %v1869_v37  ;;  %v1819_v47 = vmax.f32 %v1637_v40, 0.0 }
 0x319   : > { %v1639_v43 = vpop.f32.mrf.mxu0  ;;  %4539 = vmatmul.mubr.bf16.gmra.mxu1 %v1870_v38 }
 0x31a   : > { %v1640_v44 = vadd.f32 %v5457_v53, %v1639_v43  ;;  %v1822_v45 = vmax.f32 %v1648_v41, 0.0 }
 0x31b   : > { %v4468_v46 = vpop.f32.mrf.mxu0 }
 0x31c   : > { %v1820_v48 = vmax.f32 %v1640_v44, 0.0  ;;  %v1872_v52 = vpack.c.bf16 %v1822_v45, %v1821_v49  ;;  %v1661_v57 = vadd.f32 %v4468_v46, %v5457_v53 }
 0x31d   : > { %v1652_v50 = vpop.f32.mrf.mxu0 }
 0x31e   : > { %v1871_v51 = vpack.c.bf16 %v1820_v48, %v1819_v47  ;;  %v1653_v55 = vadd.f32 %v5457_v53, %v1652_v50  ;;  %v1825_v0 = vmax.f32 %v1661_v57, 0.0 }
 0x31f   : > { %v4469_v54 = vpop.f32.mrf.mxu0 }
 0x320   : > { %v1664_v56 = vadd.f32 %v4469_v54, %v5457_v53  ;;  %4542 = vmatprep.mubr.bf16.mxu1 %v1871_v51  ;;  %v1823_v62 = vmax.f32 %v1653_v55, 0.0 }
 0x321   : > { %v1655_v58 = vpop.f32.mrf.mxu0  ;;  %4543 = vmatmul.mubr.bf16.gmra.mxu1 %v1872_v52 }
 0x322   : > { %v1656_v59 = vadd.f32 %v5457_v53, %v1655_v58  ;;  %v1826_v60 = vmax.f32 %v1664_v56, 0.0 }
 0x323   : > { %v4472_v61 = vpop.f32.mrf.mxu0 }
 0x324   : > { %v1824_v63 = vmax.f32 %v1656_v59, 0.0  ;;  %v1874_v3 = vpack.c.bf16 %v1826_v60, %v1825_v0  ;;  %v1677_v7 = vadd.f32 %v4472_v61, %v5457_v53 }
 0x325   : > { %v1668_v1 = vpop.f32.mrf.mxu0 }
 0x326   : > { %v1873_v2 = vpack.c.bf16 %v1824_v63, %v1823_v62  ;;  %v1669_v5 = vadd.f32 %v5457_v53, %v1668_v1  ;;  %v1829_v14 = vmax.f32 %v1677_v7, 0.0 }
 0x327   : > { %v4473_v4 = vpop.f32.mrf.mxu0 }
 0x328   : > { %v1680_v6 = vadd.f32 %v4473_v4, %v5457_v53  ;;  %4546 = vmatprep.mubr.bf16.mxu1 %v1873_v2  ;;  %v1827_v12 = vmax.f32 %v1669_v5, 0.0 }
 0x329   : > { %v1671_v8 = vpop.f32.mrf.mxu0  ;;  %4547 = vmatmul.mubr.bf16.gmra.mxu1 %v1874_v3 }
 0x32a   : > { %v1672_v9 = vadd.f32 %v5457_v53, %v1671_v8  ;;  %v1830_v10 = vmax.f32 %v1680_v6, 0.0 }
 0x32b   : > { %v4476_v11 = vpop.f32.mrf.mxu0 }
 0x32c   : > { %v1828_v13 = vmax.f32 %v1672_v9, 0.0  ;;  %v1876_v17 = vpack.c.bf16 %v1830_v10, %v1829_v14  ;;  %v1693_v21 = vadd.f32 %v4476_v11, %v5457_v53 }
 0x32d   : > { %v1684_v15 = vpop.f32.mrf.mxu0 }
 0x32e   : > { %v1875_v16 = vpack.c.bf16 %v1828_v13, %v1827_v12  ;;  %v1685_v19 = vadd.f32 %v5457_v53, %v1684_v15  ;;  %v1833_v28 = vmax.f32 %v1693_v21, 0.0 }
 0x32f   : > { %v4477_v18 = vpop.f32.mrf.mxu0 }
 0x330   : > { %v1696_v20 = vadd.f32 %v4477_v18, %v5457_v53  ;;  %4550 = vmatprep.mubr.bf16.mxu1 %v1875_v16  ;;  %v1831_v26 = vmax.f32 %v1685_v19, 0.0 }
 0x331   : > { %v1687_v22 = vpop.f32.mrf.mxu0  ;;  %4551 = vmatmul.mubr.bf16.gmra.mxu1 %v1876_v17 }
 0x332   : > { %v1688_v23 = vadd.f32 %v5457_v53, %v1687_v22  ;;  %v1834_v24 = vmax.f32 %v1696_v20, 0.0 }
 0x333   : > { %v4480_v25 = vpop.f32.mrf.mxu0 }
 0x334   : > { %v1832_v27 = vmax.f32 %v1688_v23, 0.0  ;;  %v1878_v31 = vpack.c.bf16 %v1834_v24, %v1833_v28  ;;  %v1709_v35 = vadd.f32 %v4480_v25, %v5457_v53 }
 0x335   : > { %v1700_v29 = vpop.f32.mrf.mxu0 }
 0x336   : > { %v1877_v30 = vpack.c.bf16 %v1832_v27, %v1831_v26  ;;  %v1701_v33 = vadd.f32 %v5457_v53, %v1700_v29  ;;  %v1837_v42 = vmax.f32 %v1709_v35, 0.0 }
 0x337   : > { %v4481_v32 = vpop.f32.mrf.mxu0 }
 0x338   : > { %v1712_v34 = vadd.f32 %v4481_v32, %v5457_v53  ;;  %4554 = vmatprep.mubr.bf16.mxu1 %v1877_v30  ;;  %v1835_v40 = vmax.f32 %v1701_v33, 0.0 }
 0x339   : > { %v1703_v36 = vpop.f32.mrf.mxu0  ;;  %4555 = vmatmul.mubr.bf16.gmra.mxu1 %v1878_v31 }
 0x33a   : > { %v1704_v37 = vadd.f32 %v5457_v53, %v1703_v36  ;;  %v1838_v38 = vmax.f32 %v1712_v34, 0.0 }
 0x33b   : > { %v4484_v39 = vpop.f32.mrf.mxu0 }
 0x33c   : > { %v1836_v41 = vmax.f32 %v1704_v37, 0.0  ;;  %v1880_v45 = vpack.c.bf16 %v1838_v38, %v1837_v42  ;;  %v1725_v49 = vadd.f32 %v4484_v39, %v5457_v53 }
 0x33d   : > { %v1716_v43 = vpop.f32.mrf.mxu0 }
 0x33e   : > { %v1879_v44 = vpack.c.bf16 %v1836_v41, %v1835_v40  ;;  %v1717_v47 = vadd.f32 %v5457_v53, %v1716_v43  ;;  %v1841_v57 = vmax.f32 %v1725_v49, 0.0 }
 0x33f   : > { %v4485_v46 = vpop.f32.mrf.mxu0 }
 0x340   : > { %v1728_v48 = vadd.f32 %v4485_v46, %v5457_v53  ;;  %4558 = vmatprep.mubr.bf16.mxu1 %v1879_v44  ;;  %v1839_v55 = vmax.f32 %v1717_v47, 0.0 }
 0x341   : > { %v1719_v50 = vpop.f32.mrf.mxu0  ;;  %4559 = vmatmul.mubr.bf16.gmra.mxu1 %v1880_v45 }
 0x342   : > { %v1720_v51 = vadd.f32 %v5457_v53, %v1719_v50  ;;  %v1842_v52 = vmax.f32 %v1728_v48, 0.0 }
 0x343   : > { %v4488_v54 = vpop.f32.mrf.mxu0 }
 0x344   : > { %v1840_v56 = vmax.f32 %v1720_v51, 0.0  ;;  %v1882_v60 = vpack.c.bf16 %v1842_v52, %v1841_v57  ;;  %v1741_v0 = vadd.f32 %v4488_v54, %v5457_v53  ;;  %v4897_v51 = vld [vmem:[#allocation8 + $0x38] sm:$0xff]   ;;  %v4898_v52 = vld [vmem:[#allocation8 + $0x30] sm:$0xff]   ;;  %v4899_v54 = vld [vmem:[#allocation8 + $0x28] sm:$0xff]  }
 0x345   : > { %v1732_v58 = vpop.f32.mrf.mxu0  ;;  %4662 = vmatprep.subr.bf16.mxu1 %v4897_v51 }
 0x346   : > { %v1881_v59 = vpack.c.bf16 %v1840_v56, %v1839_v55  ;;  %v1733_v62 = vadd.f32 %v5457_v53, %v1732_v58  ;;  %v1845_v7 = vmax.f32 %v1741_v0, 0.0  ;;  %4663 = vmatpush3.bf16.msra.mxu1 %v4897_v51 }
 0x347   : > { %v4489_v61 = vpop.f32.mrf.mxu0  ;;  %4664 = vmatprep.subr.bf16.mxu1 %v4898_v52 }
 0x348   : > { %v1744_v63 = vadd.f32 %v4489_v61, %v5457_v53  ;;  %4562 = vmatprep.mubr.bf16.mxu1 %v1881_v59  ;;  %v1843_v5 = vmax.f32 %v1733_v62, 0.0  ;;  %v4900_v62 = vld [vmem:[#allocation8 + $0x20] sm:$0xff]  }
 0x349   : > { %v1735_v1 = vpop.f32.mrf.mxu0  ;;  %4563 = vmatmul.mubr.bf16.gmra.mxu1 %v1882_v60 }
 0x34a   : > { %v1736_v2 = vadd.f32 %v5457_v53, %v1735_v1  ;;  %v1846_v3 = vmax.f32 %v1744_v63, 0.0  ;;  %4665 = vmatpush3.bf16.msra.mxu1 %v4898_v52  ;;  %v4901_v63 = vld [vmem:[#allocation8 + $0x18] sm:$0xff]  }
 0x34b   : > { %v4492_v4 = vpop.f32.mrf.mxu0  ;;  %4666 = vmatprep.subr.bf16.mxu1 %v4899_v54 }
 0x34c   : > { %v1844_v6 = vmax.f32 %v1736_v2, 0.0  ;;  %v1884_v10 = vpack.c.bf16 %v1846_v3, %v1845_v7  ;;  %v1757_v14 = vadd.f32 %v4492_v4, %v5457_v53  ;;  %v4902_v7 = vld [vmem:[#allocation8 + $0x10] sm:$0xff]  }
 0x34d   : > { %v1748_v8 = vpop.f32.mrf.mxu0 }
 0x34e   : > { %v1883_v9 = vpack.c.bf16 %v1844_v6, %v1843_v5  ;;  %v1749_v12 = vadd.f32 %v5457_v53, %v1748_v8  ;;  %v1849_v21 = vmax.f32 %v1757_v14, 0.0  ;;  %4667 = vmatpush3.bf16.msra.mxu1 %v4899_v54 }
 0x34f   : > { %v4493_v11 = vpop.f32.mrf.mxu0  ;;  %4668 = vmatprep.subr.bf16.mxu1 %v4900_v62 }
 0x350   : > { %v1760_v13 = vadd.f32 %v4493_v11, %v5457_v53  ;;  %4566 = vmatprep.mubr.bf16.mxu1 %v1883_v9  ;;  %v1847_v19 = vmax.f32 %v1749_v12, 0.0 }
 0x351   : > { %v1751_v15 = vpop.f32.mrf.mxu0  ;;  %4567 = vmatmul.mubr.bf16.gmra.mxu1 %v1884_v10 }
 0x352   : > { %v1752_v16 = vadd.f32 %v5457_v53, %v1751_v15  ;;  %v1850_v17 = vmax.f32 %v1760_v13, 0.0  ;;  %4669 = vmatpush3.bf16.msra.mxu1 %v4900_v62  ;;  %v4903_v15 = vld [vmem:[#allocation8 + $0x8] sm:$0xff]  }
 0x353   : > { %v4496_v18 = vpop.f32.mrf.mxu0  ;;  %4670 = vmatprep.subr.bf16.mxu1 %v4901_v63 }
 0x354   : > { %v1848_v20 = vmax.f32 %v1752_v16, 0.0  ;;  %v1886_v24 = vpack.c.bf16 %v1850_v17, %v1849_v21  ;;  %v1773_v28 = vadd.f32 %v4496_v18, %v5457_v53 }
 0x355   : > { %v1764_v22 = vpop.f32.mrf.mxu0 }
 0x356   : > { %v1885_v23 = vpack.c.bf16 %v1848_v20, %v1847_v19  ;;  %v1765_v26 = vadd.f32 %v5457_v53, %v1764_v22  ;;  %v1853_v35 = vmax.f32 %v1773_v28, 0.0  ;;  %4671 = vmatpush3.bf16.msra.mxu1 %v4901_v63 }
 0x357   : > { %v4497_v25 = vpop.f32.mrf.mxu0  ;;  %4672 = vmatprep.subr.bf16.mxu1 %v4902_v7 }
 0x358   : > { %v1776_v27 = vadd.f32 %v4497_v25, %v5457_v53  ;;  %4570 = vmatprep.mubr.bf16.mxu1 %v1885_v23  ;;  %v1851_v33 = vmax.f32 %v1765_v26, 0.0  ;;  %v4904_v23 = vld [vmem:[#allocation8] sm:$0xff]  }
 0x359   : > { %v1767_v29 = vpop.f32.mrf.mxu0  ;;  %4571 = vmatmul.mubr.bf16.gmra.mxu1 %v1886_v24 }
 0x35a   : > { %v1768_v30 = vadd.f32 %v5457_v53, %v1767_v29  ;;  %v1854_v31 = vmax.f32 %v1776_v27, 0.0  ;;  %4673 = vmatpush3.bf16.msra.mxu1 %v4902_v7 }
 0x35b   : > { %v4500_v32 = vpop.f32.mrf.mxu0  ;;  %4674 = vmatprep.subr.bf16.mxu1 %v4903_v15 }
 0x35c   : > { %v1852_v34 = vmax.f32 %v1768_v30, 0.0  ;;  %v1888_v38 = vpack.c.bf16 %v1854_v31, %v1853_v35  ;;  %v1789_v42 = vadd.f32 %v4500_v32, %v5457_v53 }
 0x35d   : > { %v1780_v36 = vpop.f32.mrf.mxu0 }
 0x35e   : > { %v1887_v37 = vpack.c.bf16 %v1852_v34, %v1851_v33  ;;  %v1781_v40 = vadd.f32 %v5457_v53, %v1780_v36  ;;  %v1857_v48 = vmax.f32 %v1789_v42, 0.0  ;;  %4675 = vmatpush3.bf16.msra.mxu1 %v4903_v15 }
 0x35f   : > { %v4501_v39 = vpop.f32.mrf.mxu0  ;;  %4676 = vmatprep.subr.bf16.mxu1 %v4904_v23 }
 0x360   : > { %v1792_v41 = vadd.f32 %v4501_v39, %v5457_v53  ;;  %4574 = vmatprep.mubr.bf16.mxu1 %v1887_v37  ;;  %v1855_v46 = vmax.f32 %v1781_v40, 0.0 }
 0x361   : > { %v1783_v43 = vpop.f32.mrf.mxu0  ;;  %4575 = vmatmul.mubr.bf16.gmra.mxu1 %v1888_v38 }
 0x362   : > { %v1784_v44 = vadd.f32 %v5457_v53, %v1783_v43  ;;  %v1858_v45 = vmax.f32 %v1792_v41, 0.0  ;;  %v5523_v53 = vld [vmem:[#allocation7 + $0x3] ss:$0 sm:$0xff]  ;;  %4677 = vmatpush3.bf16.msra.mxu1 %v4904_v23 }
 0x364   : > { %v1856_v47 = vmax.f32 %v1784_v44, 0.0  ;;  %v1890_v50 = vpack.c.bf16 %v1858_v45, %v1857_v48 }
 0x366   : > { %v1889_v49 = vpack.c.bf16 %v1856_v47, %v1855_v46 }
 0x368   : > { %4578 = vmatprep.mubr.bf16.mxu1 %v1889_v49 }
 0x369   : > { %4579 = vmatmul.mubr.bf16.gmra.mxu1 %v1890_v50 }
 0x3b1   : > { %v4520_v55 = vpop.f32.mrf.mxu1 }
 0x3b2   : > { %v2007_v60 = vadd.f32 %v4520_v55, %v5523_v53 }
 0x3b3   : > { %v1998_v56 = vpop.f32.mrf.mxu1 }
 0x3b4   : > { %v1999_v58 = vadd.f32 %v5523_v53, %v1998_v56  ;;  %v2255_v5 = vmax.f32 %v2007_v60, 0.0 }
 0x3b5   : > { %v4521_v57 = vpop.f32.mrf.mxu1 }
 0x3b6   : > { %v2010_v59 = vadd.f32 %v4521_v57, %v5523_v53  ;;  %v2253_v3 = vmax.f32 %v1999_v58, 0.0 }
 0x3b7   : > { %v2001_v61 = vpop.f32.mrf.mxu1 }
 0x3b8   : > { %v2002_v0 = vadd.f32 %v5523_v53, %v2001_v61  ;;  %v2256_v1 = vmax.f32 %v2010_v59, 0.0 }
 0x3b9   : > { %v4524_v2 = vpop.f32.mrf.mxu1 }
 0x3ba   : > { %v2254_v4 = vmax.f32 %v2002_v0, 0.0  ;;  %v2318_v9 = vpack.c.bf16 %v2256_v1, %v2255_v5  ;;  %v2023_v13 = vadd.f32 %v4524_v2, %v5523_v53 }
 0x3bb   : > { %v2014_v6 = vpop.f32.mrf.mxu1 }
 0x3bc   : > { %v2317_v8 = vpack.c.bf16 %v2254_v4, %v2253_v3  ;;  %v2015_v11 = vadd.f32 %v5523_v53, %v2014_v6  ;;  %v2259_v21 = vmax.f32 %v2023_v13, 0.0 }
 0x3bd   : > { %v4525_v10 = vpop.f32.mrf.mxu1 }
 0x3be   : > { %v2026_v12 = vadd.f32 %v4525_v10, %v5523_v53  ;;  %4598 = vmatprep.mubr.bf16.mxu0 %v2317_v8  ;;  %v2257_v19 = vmax.f32 %v2015_v11, 0.0 }
 0x3bf   : > { %v2017_v14 = vpop.f32.mrf.mxu1  ;;  %4599 = vmatmul.mubr.bf16.vlgmr.msra.gmra.mxu0 %v2318_v9 }
 0x3c0   : > { %v2018_v16 = vadd.f32 %v5523_v53, %v2017_v14  ;;  %v2260_v17 = vmax.f32 %v2026_v12, 0.0 }
 0x3c1   : > { %v4528_v18 = vpop.f32.mrf.mxu1 }
 0x3c2   : > { %v2258_v20 = vmax.f32 %v2018_v16, 0.0  ;;  %v2320_v25 = vpack.c.bf16 %v2260_v17, %v2259_v21  ;;  %v2039_v29 = vadd.f32 %v4528_v18, %v5523_v53 }
 0x3c3   : > { %v2030_v22 = vpop.f32.mrf.mxu1 }
 0x3c4   : > { %v2319_v24 = vpack.c.bf16 %v2258_v20, %v2257_v19  ;;  %v2031_v27 = vadd.f32 %v5523_v53, %v2030_v22  ;;  %v2263_v36 = vmax.f32 %v2039_v29, 0.0 }
 0x3c5   : > { %v4529_v26 = vpop.f32.mrf.mxu1 }
 0x3c6   : > { %v2042_v28 = vadd.f32 %v4529_v26, %v5523_v53  ;;  %4602 = vmatprep.mubr.bf16.mxu0 %v2319_v24  ;;  %v2261_v34 = vmax.f32 %v2031_v27, 0.0 }
 0x3c7   : > { %v2033_v30 = vpop.f32.mrf.mxu1  ;;  %4603 = vmatmul.mubr.bf16.gmra.mxu0 %v2320_v25 }
 0x3c8   : > { %v2034_v31 = vadd.f32 %v5523_v53, %v2033_v30  ;;  %v2264_v32 = vmax.f32 %v2042_v28, 0.0 }
 0x3c9   : > { %v4532_v33 = vpop.f32.mrf.mxu1 }
 0x3ca   : > { %v2262_v35 = vmax.f32 %v2034_v31, 0.0  ;;  %v2322_v39 = vpack.c.bf16 %v2264_v32, %v2263_v36  ;;  %v2055_v43 = vadd.f32 %v4532_v33, %v5523_v53 }
 0x3cb   : > { %v2046_v37 = vpop.f32.mrf.mxu1 }
 0x3cc   : > { %v2321_v38 = vpack.c.bf16 %v2262_v35, %v2261_v34  ;;  %v2047_v41 = vadd.f32 %v5523_v53, %v2046_v37  ;;  %v2267_v50 = vmax.f32 %v2055_v43, 0.0 }
 0x3cd   : > { %v4533_v40 = vpop.f32.mrf.mxu1 }
 0x3ce   : > { %v2058_v42 = vadd.f32 %v4533_v40, %v5523_v53  ;;  %4606 = vmatprep.mubr.bf16.mxu0 %v2321_v38  ;;  %v2265_v48 = vmax.f32 %v2047_v41, 0.0 }
 0x3cf   : > { %v2049_v44 = vpop.f32.mrf.mxu1  ;;  %4607 = vmatmul.mubr.bf16.gmra.mxu0 %v2322_v39 }
 0x3d0   : > { %v2050_v45 = vadd.f32 %v5523_v53, %v2049_v44  ;;  %v2268_v46 = vmax.f32 %v2058_v42, 0.0 }
 0x3d1   : > { %v4536_v47 = vpop.f32.mrf.mxu1 }
 0x3d2   : > { %v2266_v49 = vmax.f32 %v2050_v45, 0.0  ;;  %v2324_v54 = vpack.c.bf16 %v2268_v46, %v2267_v50  ;;  %v2071_v58 = vadd.f32 %v4536_v47, %v5523_v53 }
 0x3d3   : > { %v2062_v51 = vpop.f32.mrf.mxu1 }
 0x3d4   : > { %v2323_v52 = vpack.c.bf16 %v2266_v49, %v2265_v48  ;;  %v2063_v56 = vadd.f32 %v5523_v53, %v2062_v51  ;;  %v2271_v1 = vmax.f32 %v2071_v58, 0.0 }
 0x3d5   : > { %v4537_v55 = vpop.f32.mrf.mxu1 }
 0x3d6   : > { %v2074_v57 = vadd.f32 %v4537_v55, %v5523_v53  ;;  %4610 = vmatprep.mubr.bf16.mxu0 %v2323_v52  ;;  %v2269_v63 = vmax.f32 %v2063_v56, 0.0 }
 0x3d7   : > { %v2065_v59 = vpop.f32.mrf.mxu1  ;;  %4611 = vmatmul.mubr.bf16.gmra.mxu0 %v2324_v54 }
 0x3d8   : > { %v2066_v60 = vadd.f32 %v5523_v53, %v2065_v59  ;;  %v2272_v61 = vmax.f32 %v2074_v57, 0.0 }
 0x3d9   : > { %v4540_v62 = vpop.f32.mrf.mxu1 }
 0x3da   : > { %v2270_v0 = vmax.f32 %v2066_v60, 0.0  ;;  %v2326_v4 = vpack.c.bf16 %v2272_v61, %v2271_v1  ;;  %v2087_v8 = vadd.f32 %v4540_v62, %v5523_v53 }
 0x3db   : > { %v2078_v2 = vpop.f32.mrf.mxu1 }
 0x3dc   : > { %v2325_v3 = vpack.c.bf16 %v2270_v0, %v2269_v63  ;;  %v2079_v6 = vadd.f32 %v5523_v53, %v2078_v2  ;;  %v2275_v15 = vmax.f32 %v2087_v8, 0.0 }
 0x3dd   : > { %v4541_v5 = vpop.f32.mrf.mxu1 }
 0x3de   : > { %v2090_v7 = vadd.f32 %v4541_v5, %v5523_v53  ;;  %4614 = vmatprep.mubr.bf16.mxu0 %v2325_v3  ;;  %v2273_v13 = vmax.f32 %v2079_v6, 0.0 }
 0x3df   : > { %v2081_v9 = vpop.f32.mrf.mxu1  ;;  %4615 = vmatmul.mubr.bf16.gmra.mxu0 %v2326_v4 }
 0x3e0   : > { %v2082_v10 = vadd.f32 %v5523_v53, %v2081_v9  ;;  %v2276_v11 = vmax.f32 %v2090_v7, 0.0 }
 0x3e1   : > { %v4544_v12 = vpop.f32.mrf.mxu1 }
 0x3e2   : > { %v2274_v14 = vmax.f32 %v2082_v10, 0.0  ;;  %v2328_v18 = vpack.c.bf16 %v2276_v11, %v2275_v15  ;;  %v2103_v22 = vadd.f32 %v4544_v12, %v5523_v53 }
 0x3e3   : > { %v2094_v16 = vpop.f32.mrf.mxu1 }
 0x3e4   : > { %v2327_v17 = vpack.c.bf16 %v2274_v14, %v2273_v13  ;;  %v2095_v20 = vadd.f32 %v5523_v53, %v2094_v16  ;;  %v2279_v29 = vmax.f32 %v2103_v22, 0.0 }
 0x3e5   : > { %v4545_v19 = vpop.f32.mrf.mxu1 }
 0x3e6   : > { %v2106_v21 = vadd.f32 %v4545_v19, %v5523_v53  ;;  %4618 = vmatprep.mubr.bf16.mxu0 %v2327_v17  ;;  %v2277_v27 = vmax.f32 %v2095_v20, 0.0 }
 0x3e7   : > { %v2097_v23 = vpop.f32.mrf.mxu1  ;;  %4619 = vmatmul.mubr.bf16.gmra.mxu0 %v2328_v18 }
 0x3e8   : > { %v2098_v24 = vadd.f32 %v5523_v53, %v2097_v23  ;;  %v2280_v25 = vmax.f32 %v2106_v21, 0.0 }
 0x3e9   : > { %v4548_v26 = vpop.f32.mrf.mxu1 }
 0x3ea   : > { %v2278_v28 = vmax.f32 %v2098_v24, 0.0  ;;  %v2330_v32 = vpack.c.bf16 %v2280_v25, %v2279_v29  ;;  %v2119_v36 = vadd.f32 %v4548_v26, %v5523_v53 }
 0x3eb   : > { %v2110_v30 = vpop.f32.mrf.mxu1 }
 0x3ec   : > { %v2329_v31 = vpack.c.bf16 %v2278_v28, %v2277_v27  ;;  %v2111_v34 = vadd.f32 %v5523_v53, %v2110_v30  ;;  %v2283_v43 = vmax.f32 %v2119_v36, 0.0 }
 0x3ed   : > { %v4549_v33 = vpop.f32.mrf.mxu1 }
 0x3ee   : > { %v2122_v35 = vadd.f32 %v4549_v33, %v5523_v53  ;;  %4622 = vmatprep.mubr.bf16.mxu0 %v2329_v31  ;;  %v2281_v41 = vmax.f32 %v2111_v34, 0.0 }
 0x3ef   : > { %v2113_v37 = vpop.f32.mrf.mxu1  ;;  %4623 = vmatmul.mubr.bf16.gmra.mxu0 %v2330_v32 }
 0x3f0   : > { %v2114_v38 = vadd.f32 %v5523_v53, %v2113_v37  ;;  %v2284_v39 = vmax.f32 %v2122_v35, 0.0 }
 0x3f1   : > { %v4552_v40 = vpop.f32.mrf.mxu1 }
 0x3f2   : > { %v2282_v42 = vmax.f32 %v2114_v38, 0.0  ;;  %v2332_v46 = vpack.c.bf16 %v2284_v39, %v2283_v43  ;;  %v2135_v50 = vadd.f32 %v4552_v40, %v5523_v53 }
 0x3f3   : > { %v2126_v44 = vpop.f32.mrf.mxu1 }
 0x3f4   : > { %v2331_v45 = vpack.c.bf16 %v2282_v42, %v2281_v41  ;;  %v2127_v48 = vadd.f32 %v5523_v53, %v2126_v44  ;;  %v2287_v58 = vmax.f32 %v2135_v50, 0.0 }
 0x3f5   : > { %v4553_v47 = vpop.f32.mrf.mxu1 }
 0x3f6   : > { %v2138_v49 = vadd.f32 %v4553_v47, %v5523_v53  ;;  %4626 = vmatprep.mubr.bf16.mxu0 %v2331_v45  ;;  %v2285_v56 = vmax.f32 %v2127_v48, 0.0 }
 0x3f7   : > { %v2129_v51 = vpop.f32.mrf.mxu1  ;;  %4627 = vmatmul.mubr.bf16.gmra.mxu0 %v2332_v46 }
 0x3f8   : > { %v2130_v52 = vadd.f32 %v5523_v53, %v2129_v51  ;;  %v2288_v54 = vmax.f32 %v2138_v49, 0.0 }
 0x3f9   : > { %v4556_v55 = vpop.f32.mrf.mxu1 }
 0x3fa   : > { %v2286_v57 = vmax.f32 %v2130_v52, 0.0  ;;  %v2334_v61 = vpack.c.bf16 %v2288_v54, %v2287_v58  ;;  %v2151_v1 = vadd.f32 %v4556_v55, %v5523_v53 }
 0x3fb   : > { %v2142_v59 = vpop.f32.mrf.mxu1 }
 0x3fc   : > { %v2333_v60 = vpack.c.bf16 %v2286_v57, %v2285_v56  ;;  %v2143_v63 = vadd.f32 %v5523_v53, %v2142_v59  ;;  %v2291_v8 = vmax.f32 %v2151_v1, 0.0 }
 0x3fd   : > { %v4557_v62 = vpop.f32.mrf.mxu1 }
 0x3fe   : > { %v2154_v0 = vadd.f32 %v4557_v62, %v5523_v53  ;;  %4630 = vmatprep.mubr.bf16.mxu0 %v2333_v60  ;;  %v2289_v6 = vmax.f32 %v2143_v63, 0.0 }
 0x3ff   : > { %v2145_v2 = vpop.f32.mrf.mxu1  ;;  %4631 = vmatmul.mubr.bf16.gmra.mxu0 %v2334_v61 }
 0x400   : > { %v2146_v3 = vadd.f32 %v5523_v53, %v2145_v2  ;;  %v2292_v4 = vmax.f32 %v2154_v0, 0.0 }
 0x401   : > { %v4560_v5 = vpop.f32.mrf.mxu1 }
 0x402   : > { %v2290_v7 = vmax.f32 %v2146_v3, 0.0  ;;  %v2336_v11 = vpack.c.bf16 %v2292_v4, %v2291_v8  ;;  %v2167_v15 = vadd.f32 %v4560_v5, %v5523_v53 }
 0x403   : > { %v2158_v9 = vpop.f32.mrf.mxu1 }
 0x404   : > { %v2335_v10 = vpack.c.bf16 %v2290_v7, %v2289_v6  ;;  %v2159_v13 = vadd.f32 %v5523_v53, %v2158_v9  ;;  %v2295_v22 = vmax.f32 %v2167_v15, 0.0 }
 0x405   : > { %v4561_v12 = vpop.f32.mrf.mxu1 }
 0x406   : > { %v2170_v14 = vadd.f32 %v4561_v12, %v5523_v53  ;;  %4634 = vmatprep.mubr.bf16.mxu0 %v2335_v10  ;;  %v2293_v20 = vmax.f32 %v2159_v13, 0.0 }
 0x407   : > { %v2161_v16 = vpop.f32.mrf.mxu1  ;;  %4635 = vmatmul.mubr.bf16.gmra.mxu0 %v2336_v11 }
 0x408   : > { %v2162_v17 = vadd.f32 %v5523_v53, %v2161_v16  ;;  %v2296_v18 = vmax.f32 %v2170_v14, 0.0 }
 0x409   : > { %v4564_v19 = vpop.f32.mrf.mxu1 }
 0x40a   : > { %v2294_v21 = vmax.f32 %v2162_v17, 0.0  ;;  %v2338_v25 = vpack.c.bf16 %v2296_v18, %v2295_v22  ;;  %v2183_v29 = vadd.f32 %v4564_v19, %v5523_v53 }
 0x40b   : > { %v2174_v23 = vpop.f32.mrf.mxu1 }
 0x40c   : > { %v2337_v24 = vpack.c.bf16 %v2294_v21, %v2293_v20  ;;  %v2175_v27 = vadd.f32 %v5523_v53, %v2174_v23  ;;  %v2299_v36 = vmax.f32 %v2183_v29, 0.0 }
 0x40d   : > { %v4565_v26 = vpop.f32.mrf.mxu1 }
 0x40e   : > { %v2186_v28 = vadd.f32 %v4565_v26, %v5523_v53  ;;  %4638 = vmatprep.mubr.bf16.mxu0 %v2337_v24  ;;  %v2297_v34 = vmax.f32 %v2175_v27, 0.0 }
 0x40f   : > { %v2177_v30 = vpop.f32.mrf.mxu1  ;;  %4639 = vmatmul.mubr.bf16.gmra.mxu0 %v2338_v25 }
 0x410   : > { %v2178_v31 = vadd.f32 %v5523_v53, %v2177_v30  ;;  %v2300_v32 = vmax.f32 %v2186_v28, 0.0 }
 0x411   : > { %v4568_v33 = vpop.f32.mrf.mxu1 }
 0x412   : > { %v2298_v35 = vmax.f32 %v2178_v31, 0.0  ;;  %v2340_v39 = vpack.c.bf16 %v2300_v32, %v2299_v36  ;;  %v2199_v43 = vadd.f32 %v4568_v33, %v5523_v53  ;;  %v5589_v33 = vld [vmem:[#allocation7 + $0x4] ss:$0 sm:$0xff] }
 0x413   : > { %v2190_v37 = vpop.f32.mrf.mxu1 }
 0x414   : > { %v2339_v38 = vpack.c.bf16 %v2298_v35, %v2297_v34  ;;  %v2191_v41 = vadd.f32 %v5523_v53, %v2190_v37  ;;  %v2303_v50 = vmax.f32 %v2199_v43, 0.0 }
 0x415   : > { %v4569_v40 = vpop.f32.mrf.mxu1 }
 0x416   : > { %v2202_v42 = vadd.f32 %v4569_v40, %v5523_v53  ;;  %4642 = vmatprep.mubr.bf16.mxu0 %v2339_v38  ;;  %v2301_v48 = vmax.f32 %v2191_v41, 0.0 }
 0x417   : > { %v2193_v44 = vpop.f32.mrf.mxu1  ;;  %4643 = vmatmul.mubr.bf16.gmra.mxu0 %v2340_v39 }
 0x418   : > { %v2194_v45 = vadd.f32 %v5523_v53, %v2193_v44  ;;  %v2304_v46 = vmax.f32 %v2202_v42, 0.0 }
 0x419   : > { %v4572_v47 = vpop.f32.mrf.mxu1 }
 0x41a   : > { %v2302_v49 = vmax.f32 %v2194_v45, 0.0  ;;  %v2342_v54 = vpack.c.bf16 %v2304_v46, %v2303_v50  ;;  %v2215_v58 = vadd.f32 %v4572_v47, %v5523_v53 }
 0x41b   : > { %v2206_v51 = vpop.f32.mrf.mxu1 }
 0x41c   : > { %v2341_v52 = vpack.c.bf16 %v2302_v49, %v2301_v48  ;;  %v2207_v56 = vadd.f32 %v5523_v53, %v2206_v51  ;;  %v2307_v1 = vmax.f32 %v2215_v58, 0.0 }
 0x41d   : > { %v4573_v55 = vpop.f32.mrf.mxu1 }
 0x41e   : > { %v2218_v57 = vadd.f32 %v4573_v55, %v5523_v53  ;;  %4646 = vmatprep.mubr.bf16.mxu0 %v2341_v52  ;;  %v2305_v63 = vmax.f32 %v2207_v56, 0.0 }
 0x41f   : > { %v2209_v59 = vpop.f32.mrf.mxu1  ;;  %4647 = vmatmul.mubr.bf16.gmra.mxu0 %v2342_v54 }
 0x420   : > { %v2210_v60 = vadd.f32 %v5523_v53, %v2209_v59  ;;  %v2308_v61 = vmax.f32 %v2218_v57, 0.0 }
 0x421   : > { %v4576_v62 = vpop.f32.mrf.mxu1 }
 0x422   : > { %v2306_v0 = vmax.f32 %v2210_v60, 0.0  ;;  %v2344_v4 = vpack.c.bf16 %v2308_v61, %v2307_v1  ;;  %v2231_v8 = vadd.f32 %v4576_v62, %v5523_v53 }
 0x423   : > { %v2222_v2 = vpop.f32.mrf.mxu1 }
 0x424   : > { %v2343_v3 = vpack.c.bf16 %v2306_v0, %v2305_v63  ;;  %v2223_v6 = vadd.f32 %v5523_v53, %v2222_v2  ;;  %v2311_v15 = vmax.f32 %v2231_v8, 0.0 }
 0x425   : > { %v4577_v5 = vpop.f32.mrf.mxu1 }
 0x426   : > { %v2234_v7 = vadd.f32 %v4577_v5, %v5523_v53  ;;  %4650 = vmatprep.mubr.bf16.mxu0 %v2343_v3  ;;  %v2309_v13 = vmax.f32 %v2223_v6, 0.0 }
 0x427   : > { %v2225_v9 = vpop.f32.mrf.mxu1  ;;  %4651 = vmatmul.mubr.bf16.gmra.mxu0 %v2344_v4 }
 0x428   : > { %v2226_v10 = vadd.f32 %v5523_v53, %v2225_v9  ;;  %v2312_v11 = vmax.f32 %v2234_v7, 0.0 }
 0x429   : > { %v4580_v12 = vpop.f32.mrf.mxu1 }
 0x42a   : > { %v2310_v14 = vmax.f32 %v2226_v10, 0.0  ;;  %v2346_v18 = vpack.c.bf16 %v2312_v11, %v2311_v15  ;;  %v2247_v22 = vadd.f32 %v4580_v12, %v5523_v53 }
 0x42b   : > { %v2238_v16 = vpop.f32.mrf.mxu1 }
 0x42c   : > { %v2345_v17 = vpack.c.bf16 %v2310_v14, %v2309_v13  ;;  %v2239_v20 = vadd.f32 %v5523_v53, %v2238_v16  ;;  %v2315_v28 = vmax.f32 %v2247_v22, 0.0 }
 0x42d   : > { %v4581_v19 = vpop.f32.mrf.mxu1 }
 0x42e   : > { %v2250_v21 = vadd.f32 %v4581_v19, %v5523_v53  ;;  %4654 = vmatprep.mubr.bf16.mxu0 %v2345_v17  ;;  %v2313_v26 = vmax.f32 %v2239_v20, 0.0 }
 0x42f   : > { %v2241_v23 = vpop.f32.mrf.mxu1  ;;  %4655 = vmatmul.mubr.bf16.gmra.mxu0 %v2346_v18 }
 0x430   : > { %v2242_v24 = vadd.f32 %v5523_v53, %v2241_v23  ;;  %v2316_v25 = vmax.f32 %v2250_v21, 0.0 }
 0x432   : > { %v2314_v27 = vmax.f32 %v2242_v24, 0.0  ;;  %v2348_v30 = vpack.c.bf16 %v2316_v25, %v2315_v28 }
 0x434   : > { %v2347_v29 = vpack.c.bf16 %v2314_v27, %v2313_v26 }
 0x436   : > { %4658 = vmatprep.mubr.bf16.mxu0 %v2347_v29 }
 0x437   : > { %4659 = vmatmul.mubr.bf16.gmra.mxu0 %v2348_v30 }
 0x47f   : > { %v4600_v31 = vpop.f32.mrf.mxu0 }
 0x480   : > { %v2465_v37 = vadd.f32 %v4600_v31, %v5589_v33 }
 0x481   : > { %v2456_v32 = vpop.f32.mrf.mxu0 }
 0x482   : > { %v2457_v35 = vadd.f32 %v5589_v33, %v2456_v32  ;;  %v2713_v43 = vmax.f32 %v2465_v37, 0.0 }
 0x483   : > { %v4601_v34 = vpop.f32.mrf.mxu0 }
 0x484   : > { %v2468_v36 = vadd.f32 %v4601_v34, %v5589_v33  ;;  %v2711_v41 = vmax.f32 %v2457_v35, 0.0 }
 0x485   : > { %v2459_v53 = vpop.f32.mrf.mxu0 }
 0x486   : > { %v2460_v38 = vadd.f32 %v5589_v33, %v2459_v53  ;;  %v2714_v39 = vmax.f32 %v2468_v36, 0.0 }
 0x487   : > { %v4604_v40 = vpop.f32.mrf.mxu0 }
 0x488   : > { %v2712_v42 = vmax.f32 %v2460_v38, 0.0  ;;  %v2776_v46 = vpack.c.bf16 %v2714_v39, %v2713_v43  ;;  %v2481_v50 = vadd.f32 %v4604_v40, %v5589_v33 }
 0x489   : > { %v2472_v44 = vpop.f32.mrf.mxu0 }
 0x48a   : > { %v2775_v45 = vpack.c.bf16 %v2712_v42, %v2711_v41  ;;  %v2473_v48 = vadd.f32 %v5589_v33, %v2472_v44  ;;  %v2717_v58 = vmax.f32 %v2481_v50, 0.0 }
 0x48b   : > { %v4605_v47 = vpop.f32.mrf.mxu0 }
 0x48c   : > { %v2484_v49 = vadd.f32 %v4605_v47, %v5589_v33  ;;  %4678 = vmatprep.mubr.bf16.mxu1 %v2775_v45  ;;  %v2715_v56 = vmax.f32 %v2473_v48, 0.0 }
 0x48d   : > { %v2475_v51 = vpop.f32.mrf.mxu0  ;;  %4679 = vmatmul.mubr.bf16.vlgmr.msra.gmra.mxu1 %v2776_v46 }
 0x48e   : > { %v2476_v52 = vadd.f32 %v5589_v33, %v2475_v51  ;;  %v2718_v54 = vmax.f32 %v2484_v49, 0.0 }
 0x48f   : > { %v4608_v55 = vpop.f32.mrf.mxu0 }
 0x490   : > { %v2716_v57 = vmax.f32 %v2476_v52, 0.0  ;;  %v2778_v61 = vpack.c.bf16 %v2718_v54, %v2717_v58  ;;  %v2497_v1 = vadd.f32 %v4608_v55, %v5589_v33 }
 0x491   : > { %v2488_v59 = vpop.f32.mrf.mxu0 }
 0x492   : > { %v2777_v60 = vpack.c.bf16 %v2716_v57, %v2715_v56  ;;  %v2489_v63 = vadd.f32 %v5589_v33, %v2488_v59  ;;  %v2721_v8 = vmax.f32 %v2497_v1, 0.0 }
 0x493   : > { %v4609_v62 = vpop.f32.mrf.mxu0 }
 0x494   : > { %v2500_v0 = vadd.f32 %v4609_v62, %v5589_v33  ;;  %4682 = vmatprep.mubr.bf16.mxu1 %v2777_v60  ;;  %v2719_v6 = vmax.f32 %v2489_v63, 0.0 }
 0x495   : > { %v2491_v2 = vpop.f32.mrf.mxu0  ;;  %4683 = vmatmul.mubr.bf16.gmra.mxu1 %v2778_v61 }
 0x496   : > { %v2492_v3 = vadd.f32 %v5589_v33, %v2491_v2  ;;  %v2722_v4 = vmax.f32 %v2500_v0, 0.0 }
 0x497   : > { %v4612_v5 = vpop.f32.mrf.mxu0 }
 0x498   : > { %v2720_v7 = vmax.f32 %v2492_v3, 0.0  ;;  %v2780_v11 = vpack.c.bf16 %v2722_v4, %v2721_v8  ;;  %v2513_v15 = vadd.f32 %v4612_v5, %v5589_v33 }
 0x499   : > { %v2504_v9 = vpop.f32.mrf.mxu0 }
 0x49a   : > { %v2779_v10 = vpack.c.bf16 %v2720_v7, %v2719_v6  ;;  %v2505_v13 = vadd.f32 %v5589_v33, %v2504_v9  ;;  %v2725_v22 = vmax.f32 %v2513_v15, 0.0 }
 0x49b   : > { %v4613_v12 = vpop.f32.mrf.mxu0 }
 0x49c   : > { %v2516_v14 = vadd.f32 %v4613_v12, %v5589_v33  ;;  %4686 = vmatprep.mubr.bf16.mxu1 %v2779_v10  ;;  %v2723_v20 = vmax.f32 %v2505_v13, 0.0 }
 0x49d   : > { %v2507_v16 = vpop.f32.mrf.mxu0  ;;  %4687 = vmatmul.mubr.bf16.gmra.mxu1 %v2780_v11 }
 0x49e   : > { %v2508_v17 = vadd.f32 %v5589_v33, %v2507_v16  ;;  %v2726_v18 = vmax.f32 %v2516_v14, 0.0 }
 0x49f   : > { %v4616_v19 = vpop.f32.mrf.mxu0 }
 0x4a0   : > { %v2724_v21 = vmax.f32 %v2508_v17, 0.0  ;;  %v2782_v25 = vpack.c.bf16 %v2726_v18, %v2725_v22  ;;  %v2529_v29 = vadd.f32 %v4616_v19, %v5589_v33 }
 0x4a1   : > { %v2520_v23 = vpop.f32.mrf.mxu0 }
 0x4a2   : > { %v2781_v24 = vpack.c.bf16 %v2724_v21, %v2723_v20  ;;  %v2521_v27 = vadd.f32 %v5589_v33, %v2520_v23  ;;  %v2729_v37 = vmax.f32 %v2529_v29, 0.0 }
 0x4a3   : > { %v4617_v26 = vpop.f32.mrf.mxu0 }
 0x4a4   : > { %v2532_v28 = vadd.f32 %v4617_v26, %v5589_v33  ;;  %4690 = vmatprep.mubr.bf16.mxu1 %v2781_v24  ;;  %v2727_v35 = vmax.f32 %v2521_v27, 0.0 }
 0x4a5   : > { %v2523_v30 = vpop.f32.mrf.mxu0  ;;  %4691 = vmatmul.mubr.bf16.gmra.mxu1 %v2782_v25 }
 0x4a6   : > { %v2524_v31 = vadd.f32 %v5589_v33, %v2523_v30  ;;  %v2730_v32 = vmax.f32 %v2532_v28, 0.0 }
 0x4a7   : > { %v4620_v34 = vpop.f32.mrf.mxu0 }
 0x4a8   : > { %v2728_v36 = vmax.f32 %v2524_v31, 0.0  ;;  %v2784_v39 = vpack.c.bf16 %v2730_v32, %v2729_v37  ;;  %v2545_v43 = vadd.f32 %v4620_v34, %v5589_v33 }
 0x4a9   : > { %v2536_v53 = vpop.f32.mrf.mxu0 }
 0x4aa   : > { %v2783_v38 = vpack.c.bf16 %v2728_v36, %v2727_v35  ;;  %v2537_v41 = vadd.f32 %v5589_v33, %v2536_v53  ;;  %v2733_v50 = vmax.f32 %v2545_v43, 0.0 }
 0x4ab   : > { %v4621_v40 = vpop.f32.mrf.mxu0 }
 0x4ac   : > { %v2548_v42 = vadd.f32 %v4621_v40, %v5589_v33  ;;  %4694 = vmatprep.mubr.bf16.mxu1 %v2783_v38  ;;  %v2731_v48 = vmax.f32 %v2537_v41, 0.0 }
 0x4ad   : > { %v2539_v44 = vpop.f32.mrf.mxu0  ;;  %4695 = vmatmul.mubr.bf16.gmra.mxu1 %v2784_v39 }
 0x4ae   : > { %v2540_v45 = vadd.f32 %v5589_v33, %v2539_v44  ;;  %v2734_v46 = vmax.f32 %v2548_v42, 0.0 }
 0x4af   : > { %v4624_v47 = vpop.f32.mrf.mxu0 }
 0x4b0   : > { %v2732_v49 = vmax.f32 %v2540_v45, 0.0  ;;  %v2786_v54 = vpack.c.bf16 %v2734_v46, %v2733_v50  ;;  %v2561_v58 = vadd.f32 %v4624_v47, %v5589_v33 }
 0x4b1   : > { %v2552_v51 = vpop.f32.mrf.mxu0 }
 0x4b2   : > { %v2785_v52 = vpack.c.bf16 %v2732_v49, %v2731_v48  ;;  %v2553_v56 = vadd.f32 %v5589_v33, %v2552_v51  ;;  %v2737_v1 = vmax.f32 %v2561_v58, 0.0 }
 0x4b3   : > { %v4625_v55 = vpop.f32.mrf.mxu0 }
 0x4b4   : > { %v2564_v57 = vadd.f32 %v4625_v55, %v5589_v33  ;;  %4698 = vmatprep.mubr.bf16.mxu1 %v2785_v52  ;;  %v2735_v63 = vmax.f32 %v2553_v56, 0.0 }
 0x4b5   : > { %v2555_v59 = vpop.f32.mrf.mxu0  ;;  %4699 = vmatmul.mubr.bf16.gmra.mxu1 %v2786_v54 }
 0x4b6   : > { %v2556_v60 = vadd.f32 %v5589_v33, %v2555_v59  ;;  %v2738_v61 = vmax.f32 %v2564_v57, 0.0 }
 0x4b7   : > { %v4628_v62 = vpop.f32.mrf.mxu0 }
 0x4b8   : > { %v2736_v0 = vmax.f32 %v2556_v60, 0.0  ;;  %v2788_v4 = vpack.c.bf16 %v2738_v61, %v2737_v1  ;;  %v2577_v8 = vadd.f32 %v4628_v62, %v5589_v33 }
 0x4b9   : > { %v2568_v2 = vpop.f32.mrf.mxu0 }
 0x4ba   : > { %v2787_v3 = vpack.c.bf16 %v2736_v0, %v2735_v63  ;;  %v2569_v6 = vadd.f32 %v5589_v33, %v2568_v2  ;;  %v2741_v15 = vmax.f32 %v2577_v8, 0.0 }
 0x4bb   : > { %v4629_v5 = vpop.f32.mrf.mxu0 }
 0x4bc   : > { %v2580_v7 = vadd.f32 %v4629_v5, %v5589_v33  ;;  %4702 = vmatprep.mubr.bf16.mxu1 %v2787_v3  ;;  %v2739_v13 = vmax.f32 %v2569_v6, 0.0 }
 0x4bd   : > { %v2571_v9 = vpop.f32.mrf.mxu0  ;;  %4703 = vmatmul.mubr.bf16.gmra.mxu1 %v2788_v4 }
 0x4be   : > { %v2572_v10 = vadd.f32 %v5589_v33, %v2571_v9  ;;  %v2742_v11 = vmax.f32 %v2580_v7, 0.0 }
 0x4bf   : > { %v4632_v12 = vpop.f32.mrf.mxu0 }
 0x4c0   : > { %v2740_v14 = vmax.f32 %v2572_v10, 0.0  ;;  %v2790_v18 = vpack.c.bf16 %v2742_v11, %v2741_v15  ;;  %v2593_v22 = vadd.f32 %v4632_v12, %v5589_v33 }
 0x4c1   : > { %v2584_v16 = vpop.f32.mrf.mxu0 }
 0x4c2   : > { %v2789_v17 = vpack.c.bf16 %v2740_v14, %v2739_v13  ;;  %v2585_v20 = vadd.f32 %v5589_v33, %v2584_v16  ;;  %v2745_v29 = vmax.f32 %v2593_v22, 0.0 }
 0x4c3   : > { %v4633_v19 = vpop.f32.mrf.mxu0 }
 0x4c4   : > { %v2596_v21 = vadd.f32 %v4633_v19, %v5589_v33  ;;  %4706 = vmatprep.mubr.bf16.mxu1 %v2789_v17  ;;  %v2743_v27 = vmax.f32 %v2585_v20, 0.0 }
 0x4c5   : > { %v2587_v23 = vpop.f32.mrf.mxu0  ;;  %4707 = vmatmul.mubr.bf16.gmra.mxu1 %v2790_v18 }
 0x4c6   : > { %v2588_v24 = vadd.f32 %v5589_v33, %v2587_v23  ;;  %v2746_v25 = vmax.f32 %v2596_v21, 0.0 }
 0x4c7   : > { %v4636_v26 = vpop.f32.mrf.mxu0 }
 0x4c8   : > { %v2744_v28 = vmax.f32 %v2588_v24, 0.0  ;;  %v2792_v32 = vpack.c.bf16 %v2746_v25, %v2745_v29  ;;  %v2609_v37 = vadd.f32 %v4636_v26, %v5589_v33 }
 0x4c9   : > { %v2600_v30 = vpop.f32.mrf.mxu0 }
 0x4ca   : > { %v2791_v31 = vpack.c.bf16 %v2744_v28, %v2743_v27  ;;  %v2601_v35 = vadd.f32 %v5589_v33, %v2600_v30  ;;  %v2749_v43 = vmax.f32 %v2609_v37, 0.0 }
 0x4cb   : > { %v4637_v34 = vpop.f32.mrf.mxu0 }
 0x4cc   : > { %v2612_v36 = vadd.f32 %v4637_v34, %v5589_v33  ;;  %4710 = vmatprep.mubr.bf16.mxu1 %v2791_v31  ;;  %v2747_v41 = vmax.f32 %v2601_v35, 0.0 }
 0x4cd   : > { %v2603_v53 = vpop.f32.mrf.mxu0  ;;  %4711 = vmatmul.mubr.bf16.gmra.mxu1 %v2792_v32 }
 0x4ce   : > { %v2604_v38 = vadd.f32 %v5589_v33, %v2603_v53  ;;  %v2750_v39 = vmax.f32 %v2612_v36, 0.0 }
 0x4cf   : > { %v4640_v40 = vpop.f32.mrf.mxu0 }
 0x4d0   : > { %v2748_v42 = vmax.f32 %v2604_v38, 0.0  ;;  %v2794_v46 = vpack.c.bf16 %v2750_v39, %v2749_v43  ;;  %v2625_v50 = vadd.f32 %v4640_v40, %v5589_v33 }
 0x4d1   : > { %v2616_v44 = vpop.f32.mrf.mxu0 }
 0x4d2   : > { %v2793_v45 = vpack.c.bf16 %v2748_v42, %v2747_v41  ;;  %v2617_v48 = vadd.f32 %v5589_v33, %v2616_v44  ;;  %v2753_v58 = vmax.f32 %v2625_v50, 0.0 }
 0x4d3   : > { %v4641_v47 = vpop.f32.mrf.mxu0 }
 0x4d4   : > { %v2628_v49 = vadd.f32 %v4641_v47, %v5589_v33  ;;  %4714 = vmatprep.mubr.bf16.mxu1 %v2793_v45  ;;  %v2751_v56 = vmax.f32 %v2617_v48, 0.0 }
 0x4d5   : > { %v2619_v51 = vpop.f32.mrf.mxu0  ;;  %4715 = vmatmul.mubr.bf16.gmra.mxu1 %v2794_v46 }
 0x4d6   : > { %v2620_v52 = vadd.f32 %v5589_v33, %v2619_v51  ;;  %v2754_v54 = vmax.f32 %v2628_v49, 0.0 }
 0x4d7   : > { %v4644_v55 = vpop.f32.mrf.mxu0 }
 0x4d8   : > { %v2752_v57 = vmax.f32 %v2620_v52, 0.0  ;;  %v2796_v61 = vpack.c.bf16 %v2754_v54, %v2753_v58  ;;  %v2641_v1 = vadd.f32 %v4644_v55, %v5589_v33 }
 0x4d9   : > { %v2632_v59 = vpop.f32.mrf.mxu0 }
 0x4da   : > { %v2795_v60 = vpack.c.bf16 %v2752_v57, %v2751_v56  ;;  %v2633_v63 = vadd.f32 %v5589_v33, %v2632_v59  ;;  %v2757_v8 = vmax.f32 %v2641_v1, 0.0 }
 0x4db   : > { %v4645_v62 = vpop.f32.mrf.mxu0 }
 0x4dc   : > { %v2644_v0 = vadd.f32 %v4645_v62, %v5589_v33  ;;  %4718 = vmatprep.mubr.bf16.mxu1 %v2795_v60  ;;  %v2755_v6 = vmax.f32 %v2633_v63, 0.0 }
 0x4dd   : > { %v2635_v2 = vpop.f32.mrf.mxu0  ;;  %4719 = vmatmul.mubr.bf16.gmra.mxu1 %v2796_v61 }
 0x4de   : > { %v2636_v3 = vadd.f32 %v5589_v33, %v2635_v2  ;;  %v2758_v4 = vmax.f32 %v2644_v0, 0.0 }
 0x4df   : > { %v4648_v5 = vpop.f32.mrf.mxu0 }
 0x4e0   : > { %v2756_v7 = vmax.f32 %v2636_v3, 0.0  ;;  %v2798_v11 = vpack.c.bf16 %v2758_v4, %v2757_v8  ;;  %v2657_v15 = vadd.f32 %v4648_v5, %v5589_v33 }
 0x4e1   : > { %v2648_v9 = vpop.f32.mrf.mxu0 }
 0x4e2   : > { %v2797_v10 = vpack.c.bf16 %v2756_v7, %v2755_v6  ;;  %v2649_v13 = vadd.f32 %v5589_v33, %v2648_v9  ;;  %v2761_v22 = vmax.f32 %v2657_v15, 0.0 }
 0x4e3   : > { %v4649_v12 = vpop.f32.mrf.mxu0 }
 0x4e4   : > { %v2660_v14 = vadd.f32 %v4649_v12, %v5589_v33  ;;  %4722 = vmatprep.mubr.bf16.mxu1 %v2797_v10  ;;  %v2759_v20 = vmax.f32 %v2649_v13, 0.0 }
 0x4e5   : > { %v2651_v16 = vpop.f32.mrf.mxu0  ;;  %4723 = vmatmul.mubr.bf16.gmra.mxu1 %v2798_v11 }
 0x4e6   : > { %v2652_v17 = vadd.f32 %v5589_v33, %v2651_v16  ;;  %v2762_v18 = vmax.f32 %v2660_v14, 0.0 }
 0x4e7   : > { %v4652_v19 = vpop.f32.mrf.mxu0 }
 0x4e8   : > { %v2760_v21 = vmax.f32 %v2652_v17, 0.0  ;;  %v2800_v25 = vpack.c.bf16 %v2762_v18, %v2761_v22  ;;  %v2673_v29 = vadd.f32 %v4652_v19, %v5589_v33 }
 0x4e9   : > { %v2664_v23 = vpop.f32.mrf.mxu0 }
 0x4ea   : > { %v2799_v24 = vpack.c.bf16 %v2760_v21, %v2759_v20  ;;  %v2665_v27 = vadd.f32 %v5589_v33, %v2664_v23  ;;  %v2765_v37 = vmax.f32 %v2673_v29, 0.0 }
 0x4eb   : > { %v4653_v26 = vpop.f32.mrf.mxu0 }
 0x4ec   : > { %v2676_v28 = vadd.f32 %v4653_v26, %v5589_v33  ;;  %4726 = vmatprep.mubr.bf16.mxu1 %v2799_v24  ;;  %v2763_v35 = vmax.f32 %v2665_v27, 0.0 }
 0x4ed   : > { %v2667_v30 = vpop.f32.mrf.mxu0  ;;  %4727 = vmatmul.mubr.bf16.gmra.mxu1 %v2800_v25 }
 0x4ee   : > { %v2668_v31 = vadd.f32 %v5589_v33, %v2667_v30  ;;  %v2766_v32 = vmax.f32 %v2676_v28, 0.0 }
 0x4ef   : > { %v4656_v34 = vpop.f32.mrf.mxu0 }
 0x4f0   : > { %v2764_v36 = vmax.f32 %v2668_v31, 0.0  ;;  %v2802_v39 = vpack.c.bf16 %v2766_v32, %v2765_v37  ;;  %v2689_v43 = vadd.f32 %v4656_v34, %v5589_v33 }
 0x4f1   : > { %v2680_v53 = vpop.f32.mrf.mxu0 }
 0x4f2   : > { %v2801_v38 = vpack.c.bf16 %v2764_v36, %v2763_v35  ;;  %v2681_v41 = vadd.f32 %v5589_v33, %v2680_v53  ;;  %v2769_v50 = vmax.f32 %v2689_v43, 0.0 }
 0x4f3   : > { %v4657_v40 = vpop.f32.mrf.mxu0 }
 0x4f4   : > { %v2692_v42 = vadd.f32 %v4657_v40, %v5589_v33  ;;  %4730 = vmatprep.mubr.bf16.mxu1 %v2801_v38  ;;  %v2767_v48 = vmax.f32 %v2681_v41, 0.0 }
 0x4f5   : > { %v2683_v44 = vpop.f32.mrf.mxu0  ;;  %4731 = vmatmul.mubr.bf16.gmra.mxu1 %v2802_v39 }
 0x4f6   : > { %v2684_v45 = vadd.f32 %v5589_v33, %v2683_v44  ;;  %v2770_v46 = vmax.f32 %v2692_v42, 0.0 }
 0x4f7   : > { %v4660_v47 = vpop.f32.mrf.mxu0 }
 0x4f8   : > { %v2768_v49 = vmax.f32 %v2684_v45, 0.0  ;;  %v2804_v54 = vpack.c.bf16 %v2770_v46, %v2769_v50  ;;  %v2705_v58 = vadd.f32 %v4660_v47, %v5589_v33 }
 0x4f9   : > { %v2696_v51 = vpop.f32.mrf.mxu0 }
 0x4fa   : > { %v2803_v52 = vpack.c.bf16 %v2768_v49, %v2767_v48  ;;  %v2697_v56 = vadd.f32 %v5589_v33, %v2696_v51  ;;  %v2773_v0 = vmax.f32 %v2705_v58, 0.0 }
 0x4fb   : > { %v4661_v55 = vpop.f32.mrf.mxu0 }
 0x4fc   : > { %v2708_v57 = vadd.f32 %v4661_v55, %v5589_v33  ;;  %4734 = vmatprep.mubr.bf16.mxu1 %v2803_v52  ;;  %v2771_v62 = vmax.f32 %v2697_v56, 0.0 }
 0x4fd   : > { %v2699_v59 = vpop.f32.mrf.mxu0  ;;  %4735 = vmatmul.mubr.bf16.gmra.mxu1 %v2804_v54 }
 0x4fe   : > { %v2700_v60 = vadd.f32 %v5589_v33, %v2699_v59  ;;  %v2774_v61 = vmax.f32 %v2708_v57, 0.0 }
 0x500   : > { %v2772_v63 = vmax.f32 %v2700_v60, 0.0  ;;  %v2806_v2 = vpack.c.bf16 %v2774_v61, %v2773_v0 }
 0x502   : > { %v2805_v1 = vpack.c.bf16 %v2772_v63, %v2771_v62 }
 0x504   : > { %4738 = vmatprep.mubr.bf16.mxu1 %v2805_v1 }
 0x505   : > { %4739 = vmatmul.mubr.bf16.gmra.mxu1 %v2806_v2 }
 0x54d   : > { %v4680_v3 = vpop.f32.mrf.mxu1 }
 0x54f   : > { %v2905_v4 = vpop.f32.mrf.mxu1 }
 0x551   : > { %v4681_v5 = vpop.f32.mrf.mxu1 }
 0x552   : > { %v3839_v6 = vpack.c.bf16 %v4681_v5, %v4680_v3 }
 0x553   : > { %v2908_v7 = vpop.f32.mrf.mxu1 }
 0x554   : > { %3991 = vst [vmem:[%s5657_s21 + $0x8] sm:$0xff] %v3839_v6   ;;  %v3834_v33 = vpack.c.bf16 %v2908_v7, %v2905_v4 }
 0x555   : > { %v4684_v8 = vpop.f32.mrf.mxu1 }
 0x556   : > { %3835 = vst [vmem:[%s5657_s21] sm:$0xff] %v3834_v33  }
 0x557   : > { %v2921_v9 = vpop.f32.mrf.mxu1 }
 0x559   : > { %v4685_v10 = vpop.f32.mrf.mxu1 }
 0x55a   : > { %v3849_v11 = vpack.c.bf16 %v4685_v10, %v4684_v8 }
 0x55b   : > { %v2924_v12 = vpop.f32.mrf.mxu1 }
 0x55c   : > { %3993 = vst [vmem:[%s5657_s21 + $0x18] sm:$0xff] %v3849_v11   ;;  %v3844_v13 = vpack.c.bf16 %v2924_v12, %v2921_v9 }
 0x55d   : > { %v4688_v14 = vpop.f32.mrf.mxu1 }
 0x55e   : > { %3992 = vst [vmem:[%s5657_s21 + $0x10] sm:$0xff] %v3844_v13  }
 0x55f   : > { %v2937_v15 = vpop.f32.mrf.mxu1 }
 0x561   : > { %v4689_v16 = vpop.f32.mrf.mxu1 }
 0x562   : > { %v3859_v17 = vpack.c.bf16 %v4689_v16, %v4688_v14 }
 0x563   : > { %v2940_v18 = vpop.f32.mrf.mxu1 }
 0x564   : > { %3995 = vst [vmem:[%s5657_s21 + $0x28] sm:$0xff] %v3859_v17   ;;  %v3854_v19 = vpack.c.bf16 %v2940_v18, %v2937_v15 }
 0x565   : > { %v4692_v20 = vpop.f32.mrf.mxu1 }
 0x566   : > { %3994 = vst [vmem:[%s5657_s21 + $0x20] sm:$0xff] %v3854_v19  }
 0x567   : > { %v2953_v21 = vpop.f32.mrf.mxu1 }
 0x569   : > { %v4693_v22 = vpop.f32.mrf.mxu1 }
 0x56a   : > { %v3869_v23 = vpack.c.bf16 %v4693_v22, %v4692_v20 }
 0x56b   : > { %v2956_v24 = vpop.f32.mrf.mxu1 }
 0x56c   : > { %3997 = vst [vmem:[%s5657_s21 + $0x38] sm:$0xff] %v3869_v23   ;;  %v3864_v25 = vpack.c.bf16 %v2956_v24, %v2953_v21 }
 0x56d   : > { %v4696_v26 = vpop.f32.mrf.mxu1 }
 0x56e   : > { %3996 = vst [vmem:[%s5657_s21 + $0x30] sm:$0xff] %v3864_v25  }
 0x56f   : > { %v2969_v27 = vpop.f32.mrf.mxu1 }
 0x571   : > { %v4697_v28 = vpop.f32.mrf.mxu1 }
 0x572   : > { %v3879_v29 = vpack.c.bf16 %v4697_v28, %v4696_v26 }
 0x573   : > { %v2972_v30 = vpop.f32.mrf.mxu1 }
 0x574   : > { %3999 = vst [vmem:[%s5657_s21 + $0x48] sm:$0xff] %v3879_v29   ;;  %v3874_v31 = vpack.c.bf16 %v2972_v30, %v2969_v27 }
 0x575   : > { %v4700_v32 = vpop.f32.mrf.mxu1 }
 0x576   : > { %3998 = vst [vmem:[%s5657_s21 + $0x40] sm:$0xff] %v3874_v31  }
 0x577   : > { %v2985_v34 = vpop.f32.mrf.mxu1 }
 0x579   : > { %v4701_v35 = vpop.f32.mrf.mxu1 }
 0x57a   : > { %v3889_v36 = vpack.c.bf16 %v4701_v35, %v4700_v32 }
 0x57b   : > { %v2988_v37 = vpop.f32.mrf.mxu1 }
 0x57c   : > { %4001 = vst [vmem:[%s5657_s21 + $0x58] sm:$0xff] %v3889_v36   ;;  %v3884_v53 = vpack.c.bf16 %v2988_v37, %v2985_v34 }
 0x57d   : > { %v4704_v38 = vpop.f32.mrf.mxu1 }
 0x57e   : > { %4000 = vst [vmem:[%s5657_s21 + $0x50] sm:$0xff] %v3884_v53  }
 0x57f   : > { %v3001_v39 = vpop.f32.mrf.mxu1 }
 0x581   : > { %v4705_v40 = vpop.f32.mrf.mxu1 }
 0x582   : > { %v3899_v41 = vpack.c.bf16 %v4705_v40, %v4704_v38 }
 0x583   : > { %v3004_v42 = vpop.f32.mrf.mxu1 }
 0x584   : > { %4003 = vst [vmem:[%s5657_s21 + $0x68] sm:$0xff] %v3899_v41   ;;  %v3894_v43 = vpack.c.bf16 %v3004_v42, %v3001_v39 }
 0x585   : > { %v4708_v44 = vpop.f32.mrf.mxu1 }
 0x586   : > { %4002 = vst [vmem:[%s5657_s21 + $0x60] sm:$0xff] %v3894_v43  }
 0x587   : > { %v3017_v45 = vpop.f32.mrf.mxu1 }
 0x589   : > { %v4709_v46 = vpop.f32.mrf.mxu1 }
 0x58a   : > { %v3909_v47 = vpack.c.bf16 %v4709_v46, %v4708_v44 }
 0x58b   : > { %v3020_v48 = vpop.f32.mrf.mxu1 }
 0x58c   : > { %4005 = vst [vmem:[%s5657_s21 + $0x78] sm:$0xff] %v3909_v47   ;;  %v3904_v49 = vpack.c.bf16 %v3020_v48, %v3017_v45 }
 0x58d   : > { %v4712_v50 = vpop.f32.mrf.mxu1 }
 0x58e   : > { %4004 = vst [vmem:[%s5657_s21 + $0x70] sm:$0xff] %v3904_v49  }
 0x58f   : > { %v3033_v51 = vpop.f32.mrf.mxu1 }
 0x591   : > { %v4713_v52 = vpop.f32.mrf.mxu1 }
 0x592   : > { %v3919_v54 = vpack.c.bf16 %v4713_v52, %v4712_v50 }
 0x593   : > { %v3036_v55 = vpop.f32.mrf.mxu1 }
 0x594   : > { %4007 = vst [vmem:[%s5657_s21 + $0x88] sm:$0xff] %v3919_v54   ;;  %v3914_v56 = vpack.c.bf16 %v3036_v55, %v3033_v51 }
 0x595   : > { %v4716_v57 = vpop.f32.mrf.mxu1 }
 0x596   : > { %4006 = vst [vmem:[%s5657_s21 + $0x80] sm:$0xff] %v3914_v56  }
 0x597   : > { %v3049_v58 = vpop.f32.mrf.mxu1 }
 0x599   : > { %v4717_v59 = vpop.f32.mrf.mxu1 }
 0x59a   : > { %v3929_v60 = vpack.c.bf16 %v4717_v59, %v4716_v57 }
 0x59b   : > { %v3052_v61 = vpop.f32.mrf.mxu1 }
 0x59c   : > { %4009 = vst [vmem:[%s5657_s21 + $0x98] sm:$0xff] %v3929_v60   ;;  %v3924_v62 = vpack.c.bf16 %v3052_v61, %v3049_v58 }
 0x59d   : > { %v4720_v63 = vpop.f32.mrf.mxu1 }
 0x59e   : > { %4008 = vst [vmem:[%s5657_s21 + $0x90] sm:$0xff] %v3924_v62  }
 0x59f   : > { %v3065_v0 = vpop.f32.mrf.mxu1 }
 0x5a1   : > { %v4721_v1 = vpop.f32.mrf.mxu1 }
 0x5a2   : > { %v3939_v2 = vpack.c.bf16 %v4721_v1, %v4720_v63 }
 0x5a3   : > { %v3068_v3 = vpop.f32.mrf.mxu1 }
 0x5a4   : > { %4011 = vst [vmem:[%s5657_s21 + $0xa8] sm:$0xff] %v3939_v2   ;;  %v3934_v4 = vpack.c.bf16 %v3068_v3, %v3065_v0 }
 0x5a5   : > { %v4724_v5 = vpop.f32.mrf.mxu1 }
 0x5a6   : > { %4010 = vst [vmem:[%s5657_s21 + $0xa0] sm:$0xff] %v3934_v4  }
 0x5a7   : > { %v3081_v6 = vpop.f32.mrf.mxu1 }
 0x5a9   : > { %v4725_v7 = vpop.f32.mrf.mxu1 }
 0x5aa   : > { %v3949_v33 = vpack.c.bf16 %v4725_v7, %v4724_v5 }
 0x5ab   : > { %v3084_v8 = vpop.f32.mrf.mxu1 }
 0x5ac   : > { %4013 = vst [vmem:[%s5657_s21 + $0xb8] sm:$0xff] %v3949_v33   ;;  %v3944_v9 = vpack.c.bf16 %v3084_v8, %v3081_v6 }
 0x5ad   : > { %v4728_v10 = vpop.f32.mrf.mxu1 }
 0x5ae   : > { %4012 = vst [vmem:[%s5657_s21 + $0xb0] sm:$0xff] %v3944_v9  }
 0x5af   : > { %v3097_v11 = vpop.f32.mrf.mxu1 }
 0x5b1   : > { %v4729_v12 = vpop.f32.mrf.mxu1 }
 0x5b2   : > { %v3959_v13 = vpack.c.bf16 %v4729_v12, %v4728_v10 }
 0x5b3   : > { %v3100_v14 = vpop.f32.mrf.mxu1 }
 0x5b4   : > { %4015 = vst [vmem:[%s5657_s21 + $0xc8] sm:$0xff] %v3959_v13   ;;  %v3954_v15 = vpack.c.bf16 %v3100_v14, %v3097_v11 }
 0x5b5   : > { %v4732_v16 = vpop.f32.mrf.mxu1 }
 0x5b6   : > { %4014 = vst [vmem:[%s5657_s21 + $0xc0] sm:$0xff] %v3954_v15  }
 0x5b7   : > { %v3113_v17 = vpop.f32.mrf.mxu1 }
 0x5b9   : > { %v4733_v18 = vpop.f32.mrf.mxu1 }
 0x5ba   : > { %v3969_v19 = vpack.c.bf16 %v4733_v18, %v4732_v16 }
 0x5bb   : > { %v3116_v20 = vpop.f32.mrf.mxu1 }
 0x5bc   : > { %4017 = vst [vmem:[%s5657_s21 + $0xd8] sm:$0xff] %v3969_v19   ;;  %v3964_v21 = vpack.c.bf16 %v3116_v20, %v3113_v17 }
 0x5bd   : > { %v4736_v22 = vpop.f32.mrf.mxu1 }
 0x5be   : > { %4016 = vst [vmem:[%s5657_s21 + $0xd0] sm:$0xff] %v3964_v21  }
 0x5bf   : > { %v3129_v23 = vpop.f32.mrf.mxu1 }
 0x5c1   : > { %v4737_v24 = vpop.f32.mrf.mxu1 }
 0x5c2   : > { %v3979_v25 = vpack.c.bf16 %v4737_v24, %v4736_v22 }
 0x5c3   : > { %v3132_v26 = vpop.f32.mrf.mxu1 }
 0x5c4   : > { %4019 = vst [vmem:[%s5657_s21 + $0xe8] sm:$0xff] %v3979_v25   ;;  %v3974_v27 = vpack.c.bf16 %v3132_v26, %v3129_v23 }
 0x5c5   : > { %v4740_v28 = vpop.f32.mrf.mxu1 }
 0x5c6   : > { %4018 = vst [vmem:[%s5657_s21 + $0xe0] sm:$0xff] %v3974_v27  }
 0x5c7   : > { %v3145_v29 = vpop.f32.mrf.mxu1 }
 0x5c9   : > { %v4741_v30 = vpop.f32.mrf.mxu1 }
 0x5ca   : > { %v3989_v31 = vpack.c.bf16 %v4741_v30, %v4740_v28 }
 0x5cb   : > { %v3148_v32 = vpop.f32.mrf.mxu1 }
 0x5cc   : > { %4021 = vst [vmem:[%s5657_s21 + $0xf8] sm:$0xff] %v3989_v31   ;;  %v3984_v34 = vpack.c.bf16 %v3148_v32, %v3145_v29 }
 0x5ce   : > { %4020 = vst [vmem:[%s5657_s21 + $0xf0] sm:$0xff] %v3984_v34  }
 0x5cf   : > { %5024 = shalt.err (!%p5021_p9)
}
 0x5d0   : > { %s5025_s12 = scalar_lea.hbm %s5694_s20, 4096  ;;  %s5029_s26 = scalar_lea.hbm %s5745_s4, 8192 }
 0x5d1   : > { %p5026_p1 = scmp.ne.s32.totalorder %s5694_s20, %s5025_s12  ;;  %p5030_p8 = scmp.lt.s32.totalorder %s5694_s20, %s5745_s4 }
 0x5d2   : > { %p5031_p5 = scmp.lt.s32.totalorder %s5029_s26, %s5025_s12 }
 0x5d3   : > { %p5027_p4 = pnand %p5026_p1, %p5762_p12 }
 0x5d4   : > { %p5032_p11 = por %p5031_p5, %p5030_p8 }
 0x5d5   : > { %p5028_p6 = pneg %p5027_p4 }
 0x5d7   : > { %p5033_p7 = pnand %p5032_p11, %p5028_p6 }
 0x5d9   : > { %5036 = shalt.err (!%p5033_p7)
}
 0x5da   : > { %s5094_s21 = smov 64   ;;  %s5095_s23 = smov 4  }
 0x5db   : > { %4756 = dma.vmem_to_hbm [thread:$0]  (%p5762_p12), %s5696_s30, 4096, %s5694_s20, %s3481_s27, %s5094_s21, %s5094_s21, %s5095_s23  }
 0x5dc PF: > { %s3509_s5 = sand.u32 1, %s5071_s15   ;;  %p5763_p13 = scmp.ne.s32.totalorder %s5751_s22, 0 }
 0x5dd   : > { %p5764_p10 = scmp.ge.s32.totalorder %s5083_s18, 2  ;;  %s3510_s13 = scalar_lea.sflag [#allocation4], %s3509_s5 }
 0x5df   : > { %p4773_p0 = pnand %p5764_p10, %p5763_p13 }
 0x5e1   : > { %p4774_p3 = pneg %p4773_p0 }
 0x5e3   : > { %5066 = dma.done.wait (%p4774_p3), %s3510_s13, 4096  }
 0x5e4   : > { %5068 = vsyncadd (%p4774_p3), %s3510_s13, 4294963200  ;;  %p19_p2 = scmp.ge.s32.totalorder %s5204_s24, 4   ;;  %s5765_s15 = smov %s5075_s16 }
 0x5e5   : > { %s5766_s16 = smov %s5079_s17  ;;  %s5767_s17 = smov %s5225_s6 }
 0x5e6   : > { %s5768_s18 = smov %s5204_s24  ;;  %21 = sbr.rel (!%p19_p2) target bundleno = 7 (0x7), region = 101 }
 0x5eb   :  { %3515 = vsyncpa [#allocation3], 1 }
 0x5ec   :  { %3517 = vsyncpa [#allocation3 + $0x1], 1 }
 0x5ed   :  { %3518 = vsyncpa [#allocation6], 1 }
 0x5ee   :  { %3519 = vsyncpa [#allocation9], 1 }
 0x5ef   :  { %3520 = vsyncpa [#allocation4], 1 }
 0x5f0   :  { %3522 = vsyncpa [#allocation4 + $0x1], 1 }

</bundles_post_ra>
